<compile_context>
chip_gen: v6e
topology: v6e:2x2x1
jax: 0.10.0
libtpu: 0.0.40
codegen_flags: <defaults>
</compile_context>

<pallas_src>
import math
from functools import partial

import jax
import jax.numpy as jnp
from jax import lax
from jax.experimental import pallas as pl
from jax.experimental.pallas import tpu as pltpu

LANE = 128
SUB = 8
OUT_PAD = 128      # lane-dense width for the final (narrow) output slab
NEG_BIG = 1e9      # additive-mask magnitude
CDT = jnp.bfloat16  # matmul operand dtype (accumulation stays f32)


def _rup(x, m):
    return ((int(x) + m - 1) // m) * m


def _pad2(w, rows, cols):
    return jnp.pad(w, ((0, rows - w.shape[0]), (0, cols - w.shape[1])))


def _pad_row(b, n):
    return jnp.pad(b, (0, n - b.shape[0])).reshape(1, n).astype(jnp.float32)


def _pad_last(a, d):
    pad = d - a.shape[-1]
    if pad == 0:
        return a
    return jnp.pad(a, [(0, 0)] * (a.ndim - 1) + [(0, pad)])


# ----------------------------------------------------------------------------
# Fused forward kernel.  grid = (B, L): one batch element, streamed layers.
# ----------------------------------------------------------------------------
def _make_fused_kernel(UP):
    def dense(x, c, w1x, w1c, b1, w2, b2):
        # silu(x @ W1x (+ ctxt @ W1c) + b1) @ W2 + b2   -- bf16 matmuls, f32 acc
        h = jnp.dot(x.astype(CDT), w1x, preferred_element_type=jnp.float32)
        if c is not None:
            h = h + jnp.dot(c.astype(CDT), w1c, preferred_element_type=jnp.float32)
        h = jax.nn.silu(h + b1)
        return jnp.dot(h.astype(CDT), w2, preferred_element_type=jnp.float32) + b2

    def _attn_tail(xq, q, k, v, bias, wo):
        # scores via dot_general (no k transpose); 1/sqrt(U) already folded in wq
        s = lax.dot_general(q.astype(CDT), k.astype(CDT), (((1,), (1,)), ((), ())),
                            preferred_element_type=jnp.float32)
        s = s + bias                                    # additive mask (keys only)
        m = jnp.max(s, axis=-1, keepdims=True)
        e = jnp.exp(s - m)
        p = e * pl.reciprocal(jnp.sum(e, axis=-1, keepdims=True), approx=True)
        a = jnp.dot(p.astype(CDT), v.astype(CDT), preferred_element_type=jnp.float32)
        return xq + jnp.dot(a.astype(CDT), wo, preferred_element_type=jnp.float32)

    def attn_self(x, bias, wqkv, wo):
        qkv = jnp.dot(x.astype(CDT), wqkv, preferred_element_type=jnp.float32)
        q, k, v = qkv[:, :UP], qkv[:, UP:2 * UP], qkv[:, 2 * UP:]   # 128-aligned
        return _attn_tail(x, q, k, v, bias, wo)

    def attn_cross(xq, xkv, bias, wq, wkv, wo):
        q = jnp.dot(xq.astype(CDT), wq, preferred_element_type=jnp.float32)
        kv = jnp.dot(xkv.astype(CDT), wkv, preferred_element_type=jnp.float32)
        k, v = kv[:, :UP], kv[:, UP:]
        return _attn_tail(xq, q, k, v, bias, wo)

    def kernel(vkq_ref, mbias_ref, scalars_ref, cnts_ref, cbias_ref,
               sc_w1, sc_b1, sc_w2, sc_b2,
               cc_w1x, cc_w1c, cc_b1, cc_w2, cc_b2,
               id_w1x, id_w1c, id_b1, id_w2, id_b2,
               le_wqkv, le_wo,
               dc_w1x, dc_w1c, dc_b1, dc_w2, dc_b2,
               enc_wqkv, enc_wo, cenc_wqkv, cenc_wo,
               dec_wq, dec_wkv, dec_wo,
               o_ref,
               x_scr, c_scr, cs_scr):
        l = pl.program_id(1)
        mbias = mbias_ref[0]                            # [1, N]
        cbias = cbias_ref[0]                            # [1, M]

        # --- layer 0: init MLPs, seed the resident activations ---------------
        @pl.when(l == 0)
        def _init():
            cs = dense(scalars_ref[0], None,
                       sc_w1[...], None, sc_b1[...], sc_w2[...], sc_b2[...])
            cs_scr[...] = cs
            c_scr[...] = dense(cnts_ref[0], cs,
                               cc_w1x[...], cc_w1c[...], cc_b1[...],
                               cc_w2[...], cc_b2[...])
            x_scr[...] = dense(vkq_ref[0], cs,
                               id_w1x[...], id_w1c[...], id_b1[...],
                               id_w2[...], id_b2[...])

        # --- every step: one transformer layer (streamed weights) ------------
        x = x_scr[...]
        c = c_scr[...]
        x = attn_self(x, mbias, enc_wqkv[0], enc_wo[0])      # inpt_encoder[l]
        c = attn_self(c, cbias, cenc_wqkv[0], cenc_wo[0])    # ctxt_encoder[l]
        x = attn_cross(x, c, cbias, dec_wq[0], dec_wkv[0], dec_wo[0])  # decoder[l]
        x_scr[...] = x
        c_scr[...] = c

        # --- last layer: last_encoder + downscale, lane-dense bf16 output ----
        @pl.when(l == pl.num_programs(1) - 1)
        def _final():
            xf = attn_self(x_scr[...], mbias, le_wqkv[...], le_wo[...])
            out = dense(xf, cs_scr[...],
                        dc_w1x[...], dc_w1c[...], dc_b1[...],
                        dc_w2[...], dc_b2[...])
            o_ref[0] = out.astype(o_ref.dtype)

    return kernel


# ----------------------------------------------------------------------------
# Parameter preparation: pad to lane multiples, fold scales, pack, cast bf16.
# ----------------------------------------------------------------------------
def _prepare_kernel_params(p, wdt=CDT):
    U = p["last_encoder"]["wo"].shape[0]
    H = p["init_dense"]["w2"].shape[0]
    vkq = p["init_dense"]["w1x"].shape[0]
    S = p["init_scalars_ctxt"]["w1x"].shape[0]
    C = p["init_conv_ctxt"]["w1x"].shape[0]
    UP, HP = _rup(U, LANE), _rup(H, LANE)
    VP, SP, CP = _rup(vkq, SUB), _rup(S, SUB), _rup(C, SUB)
    scale = 1.0 / math.sqrt(U)

    def dense_prep(dp, din_pad, dout_pad):
        out = [_pad2(dp["w1x"], din_pad, HP).astype(wdt)]
        if "w1c" in dp:
            out.append(_pad2(dp["w1c"], UP, HP).astype(wdt))
        out += [_pad_row(dp["b1"], HP),
                _pad2(dp["w2"], HP, dout_pad).astype(wdt),
                _pad_row(dp["b2"], dout_pad)]
        return out

    def attn_prep(ap):
        return (_pad2(ap["wq"] * scale, UP, UP),   # fold 1/sqrt(U) into Q cols
                _pad2(ap["wk"], UP, UP),
                _pad2(ap["wv"], UP, UP),
                _pad2(ap["wo"], UP, UP))

    def stack_self(ws):
        wqkv = jnp.stack([jnp.concatenate(w[:3], axis=1) for w in ws]).astype(wdt)
        wo = jnp.stack([w[3] for w in ws]).astype(wdt)
        return [wqkv, wo]

    def stack_cross(ws):
        wq = jnp.stack([w[0] for w in ws]).astype(wdt)
        wkv = jnp.stack([jnp.concatenate(w[1:3], axis=1) for w in ws]).astype(wdt)
        wo = jnp.stack([w[3] for w in ws]).astype(wdt)
        return [wq, wkv, wo]

    le = attn_prep(p["last_encoder"])
    return {
        "dims": (VP, SP, CP, UP, HP),
        "sc": dense_prep(p["init_scalars_ctxt"], SP, UP),
        "cc": dense_prep(p["init_conv_ctxt"], CP, UP),
        "id": dense_prep(p["init_dense"], VP, UP),
        "dc": dense_prep(p["downscale_conv"], UP, OUT_PAD),
        "le": [jnp.concatenate(le[:3], axis=1).astype(wdt), le[3].astype(wdt)],
        "enc": stack_self([attn_prep(a) for a in p["inpt_encoder"]]),
        "cenc": stack_self([attn_prep(a) for a in p["ctxt_encoder"]]),
        "dec": stack_cross([attn_prep(a) for a in p["decoder"]]),
    }


# ----------------------------------------------------------------------------
# pallas_call wrapper
# ----------------------------------------------------------------------------
def pc_diffusion_forward(params, input_vkq, mask, ctxt, num_layers):
    """Fused PCDiffusion.forward (skip_cnt=False): single pallas_call."""
    B, N, vkq_dims = input_vkq.shape
    scalars, cnts, cmask = ctxt["scalars"], ctxt["cnts"], ctxt["mask"]
    M = cnts.shape[1]

    kp = _prepare_kernel_params(params)
    VP, SP, CP, UP, HP = kp["dims"]

    # zero-pad small input feature dims to the (8-multiple) weight fan-in
    vkq_p = _pad_last(input_vkq, VP)
    scalars_p = _pad_last(scalars, SP).reshape(B, 1, SP)
    cnts_p = _pad_last(cnts, CP)
    # additive mask biases (0 where valid, -1e9 where masked); only keys masked,
    # matching the reference (outputs at masked query rows are left as-is)
    mbias = ((mask.astype(jnp.float32) - 1.0) * NEG_BIG).reshape(B, 1, N)
    cbias = ((cmask.astype(jnp.float32) - 1.0) * NEG_BIG).reshape(B, 1, M)

    data = [vkq_p, mbias, scalars_p, cnts_p, cbias]
    rep = kp["sc"] + kp["cc"] + kp["id"] + kp["le"] + kp["dc"]
    streamed = kp["enc"] + kp["cenc"] + kp["dec"]

    def _bspec(a):                                    # per-batch data block
        tail = (0,) * (a.ndim - 1)
        return pl.BlockSpec((1,) + a.shape[1:], lambda b, l, _t=tail: (b,) + _t)

    def _rspec(a):                                    # replicated weight
        idx = (0,) * a.ndim
        return pl.BlockSpec(a.shape, lambda b, l, _i=idx: _i)

    def _lspec(a):                                    # streamed per-layer weight
        tail = (0,) * (a.ndim - 1)
        return pl.BlockSpec((1,) + a.shape[1:], lambda b, l, _t=tail: (l,) + _t)

    # explicit VMEM limit sized from the resident operand set (+ headroom)
    def _blk_bytes(a, leading_block=False):
        n = a.size // a.shape[0] if leading_block else a.size
        return int(n) * a.dtype.itemsize

    resident = sum(_blk_bytes(a, True) for a in data)
    resident += sum(_blk_bytes(a) for a in rep)
    resident += sum(_blk_bytes(a, True) for a in streamed)
    resident += N * OUT_PAD * 2                       # bf16 output block
    scratch_bytes = (N * UP + M * UP + UP) * 4
    vmem_limit = min(2 * resident + scratch_bytes + (16 << 20), 112 << 20)

    kernel = _make_fused_kernel(UP)
    out_pad = pl.pallas_call(
        kernel,
        out_shape=jax.ShapeDtypeStruct((B, N, OUT_PAD), jnp.bfloat16),
        grid=(B, num_layers),
        in_specs=([_bspec(a) for a in data]
                  + [_rspec(a) for a in rep]
                  + [_lspec(a) for a in streamed]),
        out_specs=pl.BlockSpec((1, N, OUT_PAD), lambda b, l: (b, 0, 0)),
        scratch_shapes=[pltpu.VMEM((N, UP), jnp.float32),   # x (resident across l)
                        pltpu.VMEM((M, UP), jnp.float32),   # input_ctxt
                        pltpu.VMEM((1, UP), jnp.float32)],  # ctxt_scalars
        compiler_params=pltpu.CompilerParams(
            # b parallel (megacore on v7x -> keep B even), l carries state
            dimension_semantics=("parallel", "arbitrary"),
            vmem_limit_bytes=int(vmem_limit)),
    )(*data, *rep, *streamed)
    return out_pad[:, :, :vkq_dims].astype(jnp.float32)


# ----------------------------------------------------------------------------
# Pure-JAX reference (same math, no Pallas) for correctness checking
# ----------------------------------------------------------------------------
def pc_diffusion_reference(params, input_vkq, mask, ctxt, num_layers,
                           compute_dtype=jnp.float32):
    cdt = compute_dtype
    U = params["last_encoder"]["wo"].shape[0]
    scale = 1.0 / math.sqrt(U)
    mbias = ((mask.astype(jnp.float32) - 1.0) * NEG_BIG)[:, None, :]
    cbias = ((ctxt["mask"].astype(jnp.float32) - 1.0) * NEG_BIG)[:, None, :]

    def mm(a, b):
        return jnp.matmul(a.astype(cdt), b.astype(cdt),
                          preferred_element_type=jnp.float32)

    def dense(x, c, p):
        h = mm(x, p["w1x"])
        if c is not None:
            h = h + mm(c, p["w1c"])
        h = jax.nn.silu(h + p["b1"])
        return mm(h, p["w2"]) + p["b2"]

    def attn(xq, xkv, bias, p):
        q = mm(xq, p["wq"] * scale)
        k = mm(xkv, p["wk"])
        v = mm(xkv, p["wv"])
        s = jnp.einsum("bqd,bkd->bqk", q.astype(cdt), k.astype(cdt),
                       preferred_element_type=jnp.float32) + bias
        m = jnp.max(s, axis=-1, keepdims=True)
        e = jnp.exp(s - m)
        w = e / jnp.sum(e, axis=-1, keepdims=True)
        a = jnp.einsum("bqk,bkd->bqd", w.astype(cdt), v.astype(cdt),
                       preferred_element_type=jnp.float32)
        return xq + mm(a, p["wo"])

    cs = dense(ctxt["scalars"], None, params["init_scalars_ctxt"])
    cs_tok = cs[:, None, :]
    c = dense(ctxt["cnts"], cs_tok, params["init_conv_ctxt"])
    x = dense(input_vkq, cs_tok, params["init_dense"])
    for i in range(num_layers):
        x = attn(x, x, mbias, params["inpt_encoder"][i])
        c = attn(c, c, cbias, params["ctxt_encoder"][i])
        x = attn(x, c, cbias, params["decoder"][i])
    x = attn(x, x, mbias, params["last_encoder"])
    return dense(x, cs_tok, params["downscale_conv"])


# ----------------------------------------------------------------------------
# Deterministic synthetic parameters (shapes follow __init__)
# ----------------------------------------------------------------------------
def make_dense_params(key, din_x, din_c, hid, dout, zero_final=False):
    ks = jax.random.split(key, 3)
    s1 = 1.0 / math.sqrt(max(din_x + din_c, 1))
    prm = {"w1x": jax.random.normal(ks[0], (din_x, hid), jnp.float32) * s1,
           "b1": jnp.zeros((hid,), jnp.float32)}
    if din_c > 0:
        prm["w1c"] = jax.random.normal(ks[1], (din_c, hid), jnp.float32) * s1
    if zero_final:
        prm["w2"] = jnp.zeros((hid, dout), jnp.float32)
    else:
        prm["w2"] = jax.random.normal(ks[2], (hid, dout), jnp.float32) / math.sqrt(hid)
    prm["b2"] = jnp.zeros((dout,), jnp.float32)
    return prm


def make_attn_params(key, dim):
    kq, kk, kv, ko = jax.random.split(key, 4)
    sc = 1.0 / math.sqrt(dim)
    return {"wq": jax.random.normal(kq, (dim, dim), jnp.float32) * sc,
            "wk": jax.random.normal(kk, (dim, dim), jnp.float32) * sc,
            "wv": jax.random.normal(kv, (dim, dim), jnp.float32) * sc,
            "wo": jax.random.normal(ko, (dim, dim), jnp.float32) * sc}


def init_pc_diffusion_params(key, vkq_dims, upscale_dims, scalars_dim, cnts_dim,
                             hid, num_layers, skip_cnt=False, zero_final=None):
    # reference module zero-inits downscale_conv when skip_cnt=False; the test
    # overrides zero_final so the smoke test is not trivially zero.
    if zero_final is None:
        zero_final = not skip_cnt
    ks = jax.random.split(key, 5 + 3 * num_layers)
    return {
        "init_scalars_ctxt": make_dense_params(ks[0], scalars_dim, 0, hid, upscale_dims),
        "init_conv_ctxt": make_dense_params(ks[1], cnts_dim, upscale_dims, hid, upscale_dims),
        "init_dense": make_dense_params(ks[2], vkq_dims, upscale_dims, hid, upscale_dims),
        "downscale_conv": make_dense_params(ks[3], upscale_dims, upscale_dims, hid,
                                            vkq_dims, zero_final=zero_final),
        "last_encoder": make_attn_params(ks[4], upscale_dims),
        "inpt_encoder": [make_attn_params(ks[5 + 3 * i + 0], upscale_dims)
                         for i in range(num_layers)],
        "ctxt_encoder": [make_attn_params(ks[5 + 3 * i + 1], upscale_dims)
                         for i in range(num_layers)],
        "decoder": [make_attn_params(ks[5 + 3 * i + 2], upscale_dims)
                    for i in range(num_layers)],
    }


# ----------------------------------------------------------------------------
if __name__ == "__main__":
    B, N, M = 2, 8, 8                # batch (even -> v7x megacore), vkq pts, ctxt pts
    VKQ, U, S, C = 4, 64, 6, 3       # vkq_dims, upscale_dims, scalar-ctxt, cnts feat
    HID, NUM_LAYERS = 64, 2

    key = jax.random.PRNGKey(0)
    keys = jax.random.split(key, 6)
    input_vkq = jax.random.normal(keys[0], (B, N, VKQ), jnp.float32)
    mask = (jax.random.uniform(keys[1], (B, N)) > 0.2).astype(jnp.float32)
    mask = mask.at[:, 0].set(1.0)            # guarantee >=1 valid key per row
    scalars = jax.random.normal(keys[2], (B, S), jnp.float32)
    cnts = jax.random.normal(keys[3], (B, M, C), jnp.float32)
    cmask = (jax.random.uniform(keys[4], (B, M)) > 0.2).astype(jnp.float32)
    cmask = cmask.at[:, 0].set(1.0)
    ctxt = {"scalars": scalars, "cnts": cnts, "mask": cmask}

    params = init_pc_diffusion_params(keys[5], VKQ, U, S, C, HID, NUM_LAYERS,
                                      skip_cnt=False, zero_final=False)

    fwd = jax.jit(partial(pc_diffusion_forward, num_layers=NUM_LAYERS))
    out = jax.block_until_ready(fwd(params, input_vkq, mask, ctxt))
    assert out.shape == (B, N, VKQ), out.shape
    assert bool(jnp.all(jnp.isfinite(out)))

    # correctness: tight vs a bf16-matmul reference (same compute recipe),
    # loose sanity vs a full-f32 reference (bounds bf16 accumulation error).
    ref_bf16 = pc_diffusion_reference(params, input_vkq, mask, ctxt, NUM_LAYERS,
                                      compute_dtype=jnp.bfloat16)
    ref_f32 = pc_diffusion_reference(params, input_vkq, mask, ctxt, NUM_LAYERS,
                                     compute_dtype=jnp.float32)

    def _rel(a, b):
        return float(jnp.linalg.norm((a - b).ravel())
                     / (jnp.linalg.norm(b.ravel()) + 1e-6))

    err_bf16 = _rel(out, ref_bf16)
    err_f32 = _rel(out, ref_f32)
    assert err_bf16 < 3e-2, f"kernel vs bf16 reference: rel={err_bf16:.4f}"
    assert err_f32 < 2.5e-1, f"kernel vs f32 reference: rel={err_f32:.4f}"
    print("KERNEL_OK")
</pallas_src>

<mosaic_0001>
module attributes {stable_mosaic.version = 11 : i64} {
  func.func @kernel(%arg0: i32, %arg1: i32, %arg2: memref<1x8x8xf32, #tpu.memory_space<vmem>>, %arg3: memref<1x1x8xf32, #tpu.memory_space<vmem>>, %arg4: memref<1x1x8xf32, #tpu.memory_space<vmem>>, %arg5: memref<1x8x8xf32, #tpu.memory_space<vmem>>, %arg6: memref<1x1x8xf32, #tpu.memory_space<vmem>>, %arg7: memref<8x128xbf16, #tpu.memory_space<vmem>>, %arg8: memref<1x128xf32, #tpu.memory_space<vmem>>, %arg9: memref<128x128xbf16, #tpu.memory_space<vmem>>, %arg10: memref<1x128xf32, #tpu.memory_space<vmem>>, %arg11: memref<8x128xbf16, #tpu.memory_space<vmem>>, %arg12: memref<128x128xbf16, #tpu.memory_space<vmem>>, %arg13: memref<1x128xf32, #tpu.memory_space<vmem>>, %arg14: memref<128x128xbf16, #tpu.memory_space<vmem>>, %arg15: memref<1x128xf32, #tpu.memory_space<vmem>>, %arg16: memref<8x128xbf16, #tpu.memory_space<vmem>>, %arg17: memref<128x128xbf16, #tpu.memory_space<vmem>>, %arg18: memref<1x128xf32, #tpu.memory_space<vmem>>, %arg19: memref<128x128xbf16, #tpu.memory_space<vmem>>, %arg20: memref<1x128xf32, #tpu.memory_space<vmem>>, %arg21: memref<128x384xbf16, #tpu.memory_space<vmem>>, %arg22: memref<128x128xbf16, #tpu.memory_space<vmem>>, %arg23: memref<128x128xbf16, #tpu.memory_space<vmem>>, %arg24: memref<128x128xbf16, #tpu.memory_space<vmem>>, %arg25: memref<1x128xf32, #tpu.memory_space<vmem>>, %arg26: memref<128x128xbf16, #tpu.memory_space<vmem>>, %arg27: memref<1x128xf32, #tpu.memory_space<vmem>>, %arg28: memref<1x128x384xbf16, #tpu.memory_space<vmem>>, %arg29: memref<1x128x128xbf16, #tpu.memory_space<vmem>>, %arg30: memref<1x128x384xbf16, #tpu.memory_space<vmem>>, %arg31: memref<1x128x128xbf16, #tpu.memory_space<vmem>>, %arg32: memref<1x128x128xbf16, #tpu.memory_space<vmem>>, %arg33: memref<1x128x256xbf16, #tpu.memory_space<vmem>>, %arg34: memref<1x128x128xbf16, #tpu.memory_space<vmem>>, %arg35: memref<1x8x128xbf16, #tpu.memory_space<vmem>>, %arg36: memref<8x128xf32, #tpu.memory_space<vmem>>, %arg37: memref<8x128xf32, #tpu.memory_space<vmem>>, %arg38: memref<1x128xf32, #tpu.memory_space<vmem>>) attributes {dimension_semantics = [#tpu.dimension_semantics<parallel>, #tpu.dimension_semantics<arbitrary>], iteration_bounds = array<i64: 2, 2>, scalar_prefetch = 0 : i64, scratch_operands = 3 : i64, tpu.core_type = #tpu.core_type<tc>, window_params = [{transform_indices = @transform_0, window_bounds = array<i64: 1, 8, 8>}, {transform_indices = @transform_1, window_bounds = array<i64: 1, 1, 8>}, {transform_indices = @transform_2, window_bounds = array<i64: 1, 1, 8>}, {transform_indices = @transform_3, window_bounds = array<i64: 1, 8, 8>}, {transform_indices = @transform_4, window_bounds = array<i64: 1, 1, 8>}, {pipeline_mode = #tpu.pipeline_mode<synchronous>, transform_indices = @transform_5, window_bounds = array<i64: 8, 128>}, {pipeline_mode = #tpu.pipeline_mode<synchronous>, transform_indices = @transform_6, window_bounds = array<i64: 1, 128>}, {pipeline_mode = #tpu.pipeline_mode<synchronous>, transform_indices = @transform_7, window_bounds = array<i64: 128, 128>}, {pipeline_mode = #tpu.pipeline_mode<synchronous>, transform_indices = @transform_8, window_bounds = array<i64: 1, 128>}, {pipeline_mode = #tpu.pipeline_mode<synchronous>, transform_indices = @transform_9, window_bounds = array<i64: 8, 128>}, {pipeline_mode = #tpu.pipeline_mode<synchronous>, transform_indices = @transform_10, window_bounds = array<i64: 128, 128>}, {pipeline_mode = #tpu.pipeline_mode<synchronous>, transform_indices = @transform_11, window_bounds = array<i64: 1, 128>}, {pipeline_mode = #tpu.pipeline_mode<synchronous>, transform_indices = @transform_12, window_bounds = array<i64: 128, 128>}, {pipeline_mode = #tpu.pipeline_mode<synchronous>, transform_indices = @transform_13, window_bounds = array<i64: 1, 128>}, {pipeline_mode = #tpu.pipeline_mode<synchronous>, transform_indices = @transform_14, window_bounds = array<i64: 8, 128>}, {pipeline_mode = #tpu.pipeline_mode<synchronous>, transform_indices = @transform_15, window_bounds = array<i64: 128, 128>}, {pipeline_mode = #tpu.pipeline_mode<synchronous>, transform_indices = @transform_16, window_bounds = array<i64: 1, 128>}, {pipeline_mode = #tpu.pipeline_mode<synchronous>, transform_indices = @transform_17, window_bounds = array<i64: 128, 128>}, {pipeline_mode = #tpu.pipeline_mode<synchronous>, transform_indices = @transform_18, window_bounds = array<i64: 1, 128>}, {pipeline_mode = #tpu.pipeline_mode<synchronous>, transform_indices = @transform_19, window_bounds = array<i64: 128, 384>}, {pipeline_mode = #tpu.pipeline_mode<synchronous>, transform_indices = @transform_20, window_bounds = array<i64: 128, 128>}, {pipeline_mode = #tpu.pipeline_mode<synchronous>, transform_indices = @transform_21, window_bounds = array<i64: 128, 128>}, {pipeline_mode = #tpu.pipeline_mode<synchronous>, transform_indices = @transform_22, window_bounds = array<i64: 128, 128>}, {pipeline_mode = #tpu.pipeline_mode<synchronous>, transform_indices = @transform_23, window_bounds = array<i64: 1, 128>}, {pipeline_mode = #tpu.pipeline_mode<synchronous>, transform_indices = @transform_24, window_bounds = array<i64: 128, 128>}, {pipeline_mode = #tpu.pipeline_mode<synchronous>, transform_indices = @transform_25, window_bounds = array<i64: 1, 128>}, {transform_indices = @transform_26, window_bounds = array<i64: 1, 128, 384>}, {transform_indices = @transform_27, window_bounds = array<i64: 1, 128, 128>}, {transform_indices = @transform_28, window_bounds = array<i64: 1, 128, 384>}, {transform_indices = @transform_29, window_bounds = array<i64: 1, 128, 128>}, {transform_indices = @transform_30, window_bounds = array<i64: 1, 128, 128>}, {transform_indices = @transform_31, window_bounds = array<i64: 1, 128, 256>}, {transform_indices = @transform_32, window_bounds = array<i64: 1, 128, 128>}, {transform_indices = @transform_33, window_bounds = array<i64: 1, 8, 128>}]} {
    %c0 = arith.constant 0 : index
    %c0_0 = arith.constant 0 : index
    %c0_1 = arith.constant 0 : index
    %0 = vector.load %arg3[%c0, %c0_0, %c0_1] : memref<1x1x8xf32, #tpu.memory_space<vmem>>, vector<1x1x8xf32>
    %1 = vector.shape_cast %0 : vector<1x1x8xf32> to vector<1x8xf32>
    %c0_2 = arith.constant 0 : index
    %c0_3 = arith.constant 0 : index
    %c0_4 = arith.constant 0 : index
    %2 = vector.load %arg6[%c0_2, %c0_3, %c0_4] : memref<1x1x8xf32, #tpu.memory_space<vmem>>, vector<1x1x8xf32>
    %3 = vector.shape_cast %2 : vector<1x1x8xf32> to vector<1x8xf32>
    %c0_i32 = arith.constant 0 : i32
    %4 = arith.cmpi eq, %arg1, %c0_i32 : i32
    %5 = arith.extui %4 : i1 to i32
    %c0_i32_5 = arith.constant 0 : i32
    %6 = arith.cmpi ne, %5, %c0_i32_5 : i32
    scf.if %6 {
      %c0_54 = arith.constant 0 : index
      %c0_55 = arith.constant 0 : index
      %c0_56 = arith.constant 0 : index
      %107 = vector.load %arg4[%c0_54, %c0_55, %c0_56] : memref<1x1x8xf32, #tpu.memory_space<vmem>>, vector<1x1x8xf32>
      %108 = vector.shape_cast %107 : vector<1x1x8xf32> to vector<1x8xf32>
      %c0_57 = arith.constant 0 : index
      %c0_58 = arith.constant 0 : index
      %109 = vector.load %arg7[%c0_57, %c0_58] : memref<8x128xbf16, #tpu.memory_space<vmem>>, vector<8x128xbf16>
      %c0_59 = arith.constant 0 : index
      %c0_60 = arith.constant 0 : index
      %110 = vector.load %arg8[%c0_59, %c0_60] : memref<1x128xf32, #tpu.memory_space<vmem>>, vector<1x128xf32>
      %c0_61 = arith.constant 0 : index
      %c0_62 = arith.constant 0 : index
      %111 = vector.load %arg9[%c0_61, %c0_62] : memref<128x128xbf16, #tpu.memory_space<vmem>>, vector<128x128xbf16>
      %c0_63 = arith.constant 0 : index
      %c0_64 = arith.constant 0 : index
      %112 = vector.load %arg10[%c0_63, %c0_64] : memref<1x128xf32, #tpu.memory_space<vmem>>, vector<1x128xf32>
      %113 = arith.truncf %108 : vector<1x8xf32> to vector<1x8xbf16>
      %cst_65 = arith.constant dense<0.000000e+00> : vector<1x128xf32>
      %114 = tpu.matmul %113, %109, %cst_65 {dimension_numbers = #tpu.dot_dimension_numbers<[1], [0], [0], [1], [0, 0, 1, 1], [], []>} : vector<1x8xbf16>, vector<8x128xbf16>, vector<1x128xf32> -> vector<1x128xf32>
      %115 = arith.addf %114, %110 : vector<1x128xf32>
      %116 = arith.negf %115 : vector<1x128xf32>
      %117 = math.exp %116 : vector<1x128xf32>
      %cst_66 = arith.constant 1.000000e+00 : f32
      %118 = vector.broadcast %cst_66 : f32 to vector<1x128xf32>
      %119 = arith.addf %118, %117 : vector<1x128xf32>
      %120 = arith.divf %118, %119 : vector<1x128xf32>
      %121 = arith.mulf %115, %120 : vector<1x128xf32>
      %122 = arith.truncf %121 : vector<1x128xf32> to vector<1x128xbf16>
      %cst_67 = arith.constant dense<0.000000e+00> : vector<1x128xf32>
      %123 = tpu.matmul %122, %111, %cst_67 {dimension_numbers = #tpu.dot_dimension_numbers<[1], [0], [0], [1], [0, 0, 1, 1], [], []>} : vector<1x128xbf16>, vector<128x128xbf16>, vector<1x128xf32> -> vector<1x128xf32>
      %124 = arith.addf %123, %112 : vector<1x128xf32>
      %c0_68 = arith.constant 0 : index
      %c0_69 = arith.constant 0 : index
      %125 = vector.load %arg38[%c0_68, %c0_69] : memref<1x128xf32, #tpu.memory_space<vmem>>, vector<1x128xf32>
      tpu.vector_store %arg38[%c0_68, %c0_69], %124 {strides = array<i32>} : memref<1x128xf32, #tpu.memory_space<vmem>>, vector<1x128xf32>,
      %c0_70 = arith.constant 0 : index
      %c0_71 = arith.constant 0 : index
      %c0_72 = arith.constant 0 : index
      %126 = vector.load %arg5[%c0_70, %c0_71, %c0_72] : memref<1x8x8xf32, #tpu.memory_space<vmem>>, vector<1x8x8xf32>
      %127 = vector.shape_cast %126 : vector<1x8x8xf32> to vector<8x8xf32>
      %c0_73 = arith.constant 0 : index
      %c0_74 = arith.constant 0 : index
      %128 = vector.load %arg11[%c0_73, %c0_74] : memref<8x128xbf16, #tpu.memory_space<vmem>>, vector<8x128xbf16>
      %c0_75 = arith.constant 0 : index
      %c0_76 = arith.constant 0 : index
      %129 = vector.load %arg12[%c0_75, %c0_76] : memref<128x128xbf16, #tpu.memory_space<vmem>>, vector<128x128xbf16>
      %c0_77 = arith.constant 0 : index
      %c0_78 = arith.constant 0 : index
      %130 = vector.load %arg13[%c0_77, %c0_78] : memref<1x128xf32, #tpu.memory_space<vmem>>, vector<1x128xf32>
      %c0_79 = arith.constant 0 : index
      %c0_80 = arith.constant 0 : index
      %131 = vector.load %arg14[%c0_79, %c0_80] : memref<128x128xbf16, #tpu.memory_space<vmem>>, vector<128x128xbf16>
      %c0_81 = arith.constant 0 : index
      %c0_82 = arith.constant 0 : index
      %132 = vector.load %arg15[%c0_81, %c0_82] : memref<1x128xf32, #tpu.memory_space<vmem>>, vector<1x128xf32>
      %133 = arith.truncf %127 : vector<8x8xf32> to vector<8x8xbf16>
      %cst_83 = arith.constant dense<0.000000e+00> : vector<8x128xf32>
      %134 = tpu.matmul %133, %128, %cst_83 {dimension_numbers = #tpu.dot_dimension_numbers<[1], [0], [0], [1], [0, 0, 1, 1], [], []>} : vector<8x8xbf16>, vector<8x128xbf16>, vector<8x128xf32> -> vector<8x128xf32>
      %135 = arith.truncf %124 : vector<1x128xf32> to vector<1x128xbf16>
      %cst_84 = arith.constant dense<0.000000e+00> : vector<1x128xf32>
      %136 = tpu.matmul %135, %129, %cst_84 {dimension_numbers = #tpu.dot_dimension_numbers<[1], [0], [0], [1], [0, 0, 1, 1], [], []>} : vector<1x128xbf16>, vector<128x128xbf16>, vector<1x128xf32> -> vector<1x128xf32>
      %137 = vector.broadcast %136 : vector<1x128xf32> to vector<8x128xf32>
      %138 = arith.addf %134, %137 : vector<8x128xf32>
      %139 = vector.broadcast %130 : vector<1x128xf32> to vector<8x128xf32>
      %140 = arith.addf %138, %139 : vector<8x128xf32>
      %141 = arith.negf %140 : vector<8x128xf32>
      %142 = math.exp %141 : vector<8x128xf32>
      %cst_85 = arith.constant 1.000000e+00 : f32
      %143 = vector.broadcast %cst_85 : f32 to vector<8x128xf32>
      %144 = arith.addf %143, %142 : vector<8x128xf32>
      %145 = arith.divf %143, %144 : vector<8x128xf32>
      %146 = arith.mulf %140, %145 : vector<8x128xf32>
      %147 = arith.truncf %146 : vector<8x128xf32> to vector<8x128xbf16>
      %cst_86 = arith.constant dense<0.000000e+00> : vector<8x128xf32>
      %148 = tpu.matmul %147, %131, %cst_86 {dimension_numbers = #tpu.dot_dimension_numbers<[1], [0], [0], [1], [0, 0, 1, 1], [], []>} : vector<8x128xbf16>, vector<128x128xbf16>, vector<8x128xf32> -> vector<8x128xf32>
      %149 = vector.broadcast %132 : vector<1x128xf32> to vector<8x128xf32>
      %150 = arith.addf %148, %149 : vector<8x128xf32>
      %c0_87 = arith.constant 0 : index
      %c0_88 = arith.constant 0 : index
      %151 = vector.load %arg37[%c0_87, %c0_88] : memref<8x128xf32, #tpu.memory_space<vmem>>, vector<8x128xf32>
      tpu.vector_store %arg37[%c0_87, %c0_88], %150 {strides = array<i32>} : memref<8x128xf32, #tpu.memory_space<vmem>>, vector<8x128xf32>,
      %c0_89 = arith.constant 0 : index
      %c0_90 = arith.constant 0 : index
      %c0_91 = arith.constant 0 : index
      %152 = vector.load %arg2[%c0_89, %c0_90, %c0_91] : memref<1x8x8xf32, #tpu.memory_space<vmem>>, vector<1x8x8xf32>
      %153 = vector.shape_cast %152 : vector<1x8x8xf32> to vector<8x8xf32>
      %c0_92 = arith.constant 0 : index
      %c0_93 = arith.constant 0 : index
      %154 = vector.load %arg16[%c0_92, %c0_93] : memref<8x128xbf16, #tpu.memory_space<vmem>>, vector<8x128xbf16>
      %c0_94 = arith.constant 0 : index
      %c0_95 = arith.constant 0 : index
      %155 = vector.load %arg17[%c0_94, %c0_95] : memref<128x128xbf16, #tpu.memory_space<vmem>>, vector<128x128xbf16>
      %c0_96 = arith.constant 0 : index
      %c0_97 = arith.constant 0 : index
      %156 = vector.load %arg18[%c0_96, %c0_97] : memref<1x128xf32, #tpu.memory_space<vmem>>, vector<1x128xf32>
      %c0_98 = arith.constant 0 : index
      %c0_99 = arith.constant 0 : index
      %157 = vector.load %arg19[%c0_98, %c0_99] : memref<128x128xbf16, #tpu.memory_space<vmem>>, vector<128x128xbf16>
      %c0_100 = arith.constant 0 : index
      %c0_101 = arith.constant 0 : index
      %158 = vector.load %arg20[%c0_100, %c0_101] : memref<1x128xf32, #tpu.memory_space<vmem>>, vector<1x128xf32>
      %159 = arith.truncf %153 : vector<8x8xf32> to vector<8x8xbf16>
      %cst_102 = arith.constant dense<0.000000e+00> : vector<8x128xf32>
      %160 = tpu.matmul %159, %154, %cst_102 {dimension_numbers = #tpu.dot_dimension_numbers<[1], [0], [0], [1], [0, 0, 1, 1], [], []>} : vector<8x8xbf16>, vector<8x128xbf16>, vector<8x128xf32> -> vector<8x128xf32>
      %161 = arith.truncf %124 : vector<1x128xf32> to vector<1x128xbf16>
      %cst_103 = arith.constant dense<0.000000e+00> : vector<1x128xf32>
      %162 = tpu.matmul %161, %155, %cst_103 {dimension_numbers = #tpu.dot_dimension_numbers<[1], [0], [0], [1], [0, 0, 1, 1], [], []>} : vector<1x128xbf16>, vector<128x128xbf16>, vector<1x128xf32> -> vector<1x128xf32>
      %163 = vector.broadcast %162 : vector<1x128xf32> to vector<8x128xf32>
      %164 = arith.addf %160, %163 : vector<8x128xf32>
      %165 = vector.broadcast %156 : vector<1x128xf32> to vector<8x128xf32>
      %166 = arith.addf %164, %165 : vector<8x128xf32>
      %167 = arith.negf %166 : vector<8x128xf32>
      %168 = math.exp %167 : vector<8x128xf32>
      %cst_104 = arith.constant 1.000000e+00 : f32
      %169 = vector.broadcast %cst_104 : f32 to vector<8x128xf32>
      %170 = arith.addf %169, %168 : vector<8x128xf32>
      %171 = arith.divf %169, %170 : vector<8x128xf32>
      %172 = arith.mulf %166, %171 : vector<8x128xf32>
      %173 = arith.truncf %172 : vector<8x128xf32> to vector<8x128xbf16>
      %cst_105 = arith.constant dense<0.000000e+00> : vector<8x128xf32>
      %174 = tpu.matmul %173, %157, %cst_105 {dimension_numbers = #tpu.dot_dimension_numbers<[1], [0], [0], [1], [0, 0, 1, 1], [], []>} : vector<8x128xbf16>, vector<128x128xbf16>, vector<8x128xf32> -> vector<8x128xf32>
      %175 = vector.broadcast %158 : vector<1x128xf32> to vector<8x128xf32>
      %176 = arith.addf %174, %175 : vector<8x128xf32>
      %c0_106 = arith.constant 0 : index
      %c0_107 = arith.constant 0 : index
      %177 = vector.load %arg36[%c0_106, %c0_107] : memref<8x128xf32, #tpu.memory_space<vmem>>, vector<8x128xf32>
      tpu.vector_store %arg36[%c0_106, %c0_107], %176 {strides = array<i32>} : memref<8x128xf32, #tpu.memory_space<vmem>>, vector<8x128xf32>,
    } else {
    }
    %c0_6 = arith.constant 0 : index
    %c0_7 = arith.constant 0 : index
    %7 = vector.load %arg36[%c0_6, %c0_7] : memref<8x128xf32, #tpu.memory_space<vmem>>, vector<8x128xf32>
    %c0_8 = arith.constant 0 : index
    %c0_9 = arith.constant 0 : index
    %8 = vector.load %arg37[%c0_8, %c0_9] : memref<8x128xf32, #tpu.memory_space<vmem>>, vector<8x128xf32>
    %c0_10 = arith.constant 0 : index
    %c0_11 = arith.constant 0 : index
    %c0_12 = arith.constant 0 : index
    %9 = vector.load %arg28[%c0_10, %c0_11, %c0_12] : memref<1x128x384xbf16, #tpu.memory_space<vmem>>, vector<1x128x384xbf16>
    %10 = vector.shape_cast %9 : vector<1x128x384xbf16> to vector<128x384xbf16>
    %c0_13 = arith.constant 0 : index
    %c0_14 = arith.constant 0 : index
    %c0_15 = arith.constant 0 : index
    %11 = vector.load %arg29[%c0_13, %c0_14, %c0_15] : memref<1x128x128xbf16, #tpu.memory_space<vmem>>, vector<1x128x128xbf16>
    %12 = vector.shape_cast %11 : vector<1x128x128xbf16> to vector<128x128xbf16>
    %13 = arith.truncf %7 : vector<8x128xf32> to vector<8x128xbf16>
    %cst = arith.constant dense<0.000000e+00> : vector<8x384xf32>
    %14 = tpu.matmul %13, %10, %cst {dimension_numbers = #tpu.dot_dimension_numbers<[1], [0], [0], [1], [0, 0, 1, 1], [], []>} : vector<8x128xbf16>, vector<128x384xbf16>, vector<8x384xf32> -> vector<8x384xf32>
    %15 = vector.extract_strided_slice %14 {offsets = [0, 0], sizes = [8, 128], strides = [1, 1]} : vector<8x384xf32> to vector<8x128xf32>
    %16 = vector.extract_strided_slice %14 {offsets = [0, 128], sizes = [8, 128], strides = [1, 1]} : vector<8x384xf32> to vector<8x128xf32>
    %17 = vector.extract_strided_slice %14 {offsets = [0, 256], sizes = [8, 128], strides = [1, 1]} : vector<8x384xf32> to vector<8x128xf32>
    %18 = arith.truncf %15 : vector<8x128xf32> to vector<8x128xbf16>
    %19 = arith.truncf %16 : vector<8x128xf32> to vector<8x128xbf16>
    %cst_16 = arith.constant dense<0.000000e+00> : vector<8x8xf32>
    %20 = tpu.matmul %18, %19, %cst_16 {dimension_numbers = #tpu.dot_dimension_numbers<[1], [1], [0], [0], [0, 0, 1, 0], [], []>} : vector<8x128xbf16>, vector<8x128xbf16>, vector<8x8xf32> -> vector<8x8xf32>
    %21 = vector.broadcast %1 : vector<1x8xf32> to vector<8x8xf32>
    %22 = arith.addf %20, %21 : vector<8x8xf32>
    %cst_17 = arith.constant dense<0xFF800000> : vector<8xf32>
    %23 = vector.multi_reduction <maximumf>, %22, %cst_17 [1] : vector<8x8xf32> to vector<8xf32>
    %24 = vector.shape_cast %23 : vector<8xf32> to vector<8x1xf32>
    %25 = vector.broadcast %24 : vector<8x1xf32> to vector<8x8xf32>
    %26 = arith.subf %22, %25 : vector<8x8xf32>
    %27 = math.exp %26 : vector<8x8xf32>
    %cst_18 = arith.constant dense<0.000000e+00> : vector<8xf32>
    %28 = vector.multi_reduction <add>, %27, %cst_18 [1] : vector<8x8xf32> to vector<8xf32>
    %29 = vector.shape_cast %28 : vector<8xf32> to vector<8x1xf32>
    %30 = tpu.reciprocal %29 {approx = true} : vector<8x1xf32> -> vector<8x1xf32>
    %31 = vector.broadcast %30 : vector<8x1xf32> to vector<8x8xf32>
    %32 = arith.mulf %27, %31 : vector<8x8xf32>
    %33 = arith.truncf %32 : vector<8x8xf32> to vector<8x8xbf16>
    %34 = arith.truncf %17 : vector<8x128xf32> to vector<8x128xbf16>
    %cst_19 = arith.constant dense<0.000000e+00> : vector<8x128xf32>
    %35 = tpu.matmul %33, %34, %cst_19 {dimension_numbers = #tpu.dot_dimension_numbers<[1], [0], [0], [1], [0, 0, 1, 1], [], []>} : vector<8x8xbf16>, vector<8x128xbf16>, vector<8x128xf32> -> vector<8x128xf32>
    %36 = arith.truncf %35 : vector<8x128xf32> to vector<8x128xbf16>
    %cst_20 = arith.constant dense<0.000000e+00> : vector<8x128xf32>
    %37 = tpu.matmul %36, %12, %cst_20 {dimension_numbers = #tpu.dot_dimension_numbers<[1], [0], [0], [1], [0, 0, 1, 1], [], []>} : vector<8x128xbf16>, vector<128x128xbf16>, vector<8x128xf32> -> vector<8x128xf32>
    %38 = arith.addf %7, %37 : vector<8x128xf32>
    %c0_21 = arith.constant 0 : index
    %c0_22 = arith.constant 0 : index
    %c0_23 = arith.constant 0 : index
    %39 = vector.load %arg30[%c0_21, %c0_22, %c0_23] : memref<1x128x384xbf16, #tpu.memory_space<vmem>>, vector<1x128x384xbf16>
    %40 = vector.shape_cast %39 : vector<1x128x384xbf16> to vector<128x384xbf16>
    %c0_24 = arith.constant 0 : index
    %c0_25 = arith.constant 0 : index
    %c0_26 = arith.constant 0 : index
    %41 = vector.load %arg31[%c0_24, %c0_25, %c0_26] : memref<1x128x128xbf16, #tpu.memory_space<vmem>>, vector<1x128x128xbf16>
    %42 = vector.shape_cast %41 : vector<1x128x128xbf16> to vector<128x128xbf16>
    %43 = arith.truncf %8 : vector<8x128xf32> to vector<8x128xbf16>
    %cst_27 = arith.constant dense<0.000000e+00> : vector<8x384xf32>
    %44 = tpu.matmul %43, %40, %cst_27 {dimension_numbers = #tpu.dot_dimension_numbers<[1], [0], [0], [1], [0, 0, 1, 1], [], []>} : vector<8x128xbf16>, vector<128x384xbf16>, vector<8x384xf32> -> vector<8x384xf32>
    %45 = vector.extract_strided_slice %44 {offsets = [0, 0], sizes = [8, 128], strides = [1, 1]} : vector<8x384xf32> to vector<8x128xf32>
    %46 = vector.extract_strided_slice %44 {offsets = [0, 128], sizes = [8, 128], strides = [1, 1]} : vector<8x384xf32> to vector<8x128xf32>
    %47 = vector.extract_strided_slice %44 {offsets = [0, 256], sizes = [8, 128], strides = [1, 1]} : vector<8x384xf32> to vector<8x128xf32>
    %48 = arith.truncf %45 : vector<8x128xf32> to vector<8x128xbf16>
    %49 = arith.truncf %46 : vector<8x128xf32> to vector<8x128xbf16>
    %cst_28 = arith.constant dense<0.000000e+00> : vector<8x8xf32>
    %50 = tpu.matmul %48, %49, %cst_28 {dimension_numbers = #tpu.dot_dimension_numbers<[1], [1], [0], [0], [0, 0, 1, 0], [], []>} : vector<8x128xbf16>, vector<8x128xbf16>, vector<8x8xf32> -> vector<8x8xf32>
    %51 = vector.broadcast %3 : vector<1x8xf32> to vector<8x8xf32>
    %52 = arith.addf %50, %51 : vector<8x8xf32>
    %cst_29 = arith.constant dense<0xFF800000> : vector<8xf32>
    %53 = vector.multi_reduction <maximumf>, %52, %cst_29 [1] : vector<8x8xf32> to vector<8xf32>
    %54 = vector.shape_cast %53 : vector<8xf32> to vector<8x1xf32>
    %55 = vector.broadcast %54 : vector<8x1xf32> to vector<8x8xf32>
    %56 = arith.subf %52, %55 : vector<8x8xf32>
    %57 = math.exp %56 : vector<8x8xf32>
    %cst_30 = arith.constant dense<0.000000e+00> : vector<8xf32>
    %58 = vector.multi_reduction <add>, %57, %cst_30 [1] : vector<8x8xf32> to vector<8xf32>
    %59 = vector.shape_cast %58 : vector<8xf32> to vector<8x1xf32>
    %60 = tpu.reciprocal %59 {approx = true} : vector<8x1xf32> -> vector<8x1xf32>
    %61 = vector.broadcast %60 : vector<8x1xf32> to vector<8x8xf32>
    %62 = arith.mulf %57, %61 : vector<8x8xf32>
    %63 = arith.truncf %62 : vector<8x8xf32> to vector<8x8xbf16>
    %64 = arith.truncf %47 : vector<8x128xf32> to vector<8x128xbf16>
    %cst_31 = arith.constant dense<0.000000e+00> : vector<8x128xf32>
    %65 = tpu.matmul %63, %64, %cst_31 {dimension_numbers = #tpu.dot_dimension_numbers<[1], [0], [0], [1], [0, 0, 1, 1], [], []>} : vector<8x8xbf16>, vector<8x128xbf16>, vector<8x128xf32> -> vector<8x128xf32>
    %66 = arith.truncf %65 : vector<8x128xf32> to vector<8x128xbf16>
    %cst_32 = arith.constant dense<0.000000e+00> : vector<8x128xf32>
    %67 = tpu.matmul %66, %42, %cst_32 {dimension_numbers = #tpu.dot_dimension_numbers<[1], [0], [0], [1], [0, 0, 1, 1], [], []>} : vector<8x128xbf16>, vector<128x128xbf16>, vector<8x128xf32> -> vector<8x128xf32>
    %68 = arith.addf %8, %67 : vector<8x128xf32>
    %c0_33 = arith.constant 0 : index
    %c0_34 = arith.constant 0 : index
    %c0_35 = arith.constant 0 : index
    %69 = vector.load %arg32[%c0_33, %c0_34, %c0_35] : memref<1x128x128xbf16, #tpu.memory_space<vmem>>, vector<1x128x128xbf16>
    %70 = vector.shape_cast %69 : vector<1x128x128xbf16> to vector<128x128xbf16>
    %c0_36 = arith.constant 0 : index
    %c0_37 = arith.constant 0 : index
    %c0_38 = arith.constant 0 : index
    %71 = vector.load %arg33[%c0_36, %c0_37, %c0_38] : memref<1x128x256xbf16, #tpu.memory_space<vmem>>, vector<1x128x256xbf16>
    %72 = vector.shape_cast %71 : vector<1x128x256xbf16> to vector<128x256xbf16>
    %c0_39 = arith.constant 0 : index
    %c0_40 = arith.constant 0 : index
    %c0_41 = arith.constant 0 : index
    %73 = vector.load %arg34[%c0_39, %c0_40, %c0_41] : memref<1x128x128xbf16, #tpu.memory_space<vmem>>, vector<1x128x128xbf16>
    %74 = vector.shape_cast %73 : vector<1x128x128xbf16> to vector<128x128xbf16>
    %75 = arith.truncf %38 : vector<8x128xf32> to vector<8x128xbf16>
    %cst_42 = arith.constant dense<0.000000e+00> : vector<8x128xf32>
    %76 = tpu.matmul %75, %70, %cst_42 {dimension_numbers = #tpu.dot_dimension_numbers<[1], [0], [0], [1], [0, 0, 1, 1], [], []>} : vector<8x128xbf16>, vector<128x128xbf16>, vector<8x128xf32> -> vector<8x128xf32>
    %77 = arith.truncf %68 : vector<8x128xf32> to vector<8x128xbf16>
    %cst_43 = arith.constant dense<0.000000e+00> : vector<8x256xf32>
    %78 = tpu.matmul %77, %72, %cst_43 {dimension_numbers = #tpu.dot_dimension_numbers<[1], [0], [0], [1], [0, 0, 1, 1], [], []>} : vector<8x128xbf16>, vector<128x256xbf16>, vector<8x256xf32> -> vector<8x256xf32>
    %79 = vector.extract_strided_slice %78 {offsets = [0, 0], sizes = [8, 128], strides = [1, 1]} : vector<8x256xf32> to vector<8x128xf32>
    %80 = vector.extract_strided_slice %78 {offsets = [0, 128], sizes = [8, 128], strides = [1, 1]} : vector<8x256xf32> to vector<8x128xf32>
    %81 = arith.truncf %76 : vector<8x128xf32> to vector<8x128xbf16>
    %82 = arith.truncf %79 : vector<8x128xf32> to vector<8x128xbf16>
    %cst_44 = arith.constant dense<0.000000e+00> : vector<8x8xf32>
    %83 = tpu.matmul %81, %82, %cst_44 {dimension_numbers = #tpu.dot_dimension_numbers<[1], [1], [0], [0], [0, 0, 1, 0], [], []>} : vector<8x128xbf16>, vector<8x128xbf16>, vector<8x8xf32> -> vector<8x8xf32>
    %84 = vector.broadcast %3 : vector<1x8xf32> to vector<8x8xf32>
    %85 = arith.addf %83, %84 : vector<8x8xf32>
    %cst_45 = arith.constant dense<0xFF800000> : vector<8xf32>
    %86 = vector.multi_reduction <maximumf>, %85, %cst_45 [1] : vector<8x8xf32> to vector<8xf32>
    %87 = vector.shape_cast %86 : vector<8xf32> to vector<8x1xf32>
    %88 = vector.broadcast %87 : vector<8x1xf32> to vector<8x8xf32>
    %89 = arith.subf %85, %88 : vector<8x8xf32>
    %90 = math.exp %89 : vector<8x8xf32>
    %cst_46 = arith.constant dense<0.000000e+00> : vector<8xf32>
    %91 = vector.multi_reduction <add>, %90, %cst_46 [1] : vector<8x8xf32> to vector<8xf32>
    %92 = vector.shape_cast %91 : vector<8xf32> to vector<8x1xf32>
    %93 = tpu.reciprocal %92 {approx = true} : vector<8x1xf32> -> vector<8x1xf32>
    %94 = vector.broadcast %93 : vector<8x1xf32> to vector<8x8xf32>
    %95 = arith.mulf %90, %94 : vector<8x8xf32>
    %96 = arith.truncf %95 : vector<8x8xf32> to vector<8x8xbf16>
    %97 = arith.truncf %80 : vector<8x128xf32> to vector<8x128xbf16>
    %cst_47 = arith.constant dense<0.000000e+00> : vector<8x128xf32>
    %98 = tpu.matmul %96, %97, %cst_47 {dimension_numbers = #tpu.dot_dimension_numbers<[1], [0], [0], [1], [0, 0, 1, 1], [], []>} : vector<8x8xbf16>, vector<8x128xbf16>, vector<8x128xf32> -> vector<8x128xf32>
    %99 = arith.truncf %98 : vector<8x128xf32> to vector<8x128xbf16>
    %cst_48 = arith.constant dense<0.000000e+00> : vector<8x128xf32>
    %100 = tpu.matmul %99, %74, %cst_48 {dimension_numbers = #tpu.dot_dimension_numbers<[1], [0], [0], [1], [0, 0, 1, 1], [], []>} : vector<8x128xbf16>, vector<128x128xbf16>, vector<8x128xf32> -> vector<8x128xf32>
    %101 = arith.addf %38, %100 : vector<8x128xf32>
    %c0_49 = arith.constant 0 : index
    %c0_50 = arith.constant 0 : index
    %102 = vector.load %arg36[%c0_49, %c0_50] : memref<8x128xf32, #tpu.memory_space<vmem>>, vector<8x128xf32>
    tpu.vector_store %arg36[%c0_49, %c0_50], %101 {strides = array<i32>} : memref<8x128xf32, #tpu.memory_space<vmem>>, vector<8x128xf32>,
    %c0_51 = arith.constant 0 : index
    %c0_52 = arith.constant 0 : index
    %103 = vector.load %arg37[%c0_51, %c0_52] : memref<8x128xf32, #tpu.memory_space<vmem>>, vector<8x128xf32>
    tpu.vector_store %arg37[%c0_51, %c0_52], %68 {strides = array<i32>} : memref<8x128xf32, #tpu.memory_space<vmem>>, vector<8x128xf32>,
    %c1_i32 = arith.constant 1 : i32
    %104 = arith.cmpi eq, %arg1, %c1_i32 : i32
    %105 = arith.extui %104 : i1 to i32
    %c0_i32_53 = arith.constant 0 : i32
    %106 = arith.cmpi ne, %105, %c0_i32_53 : i32
    scf.if %106 {
      %c0_54 = arith.constant 0 : index
      %c0_55 = arith.constant 0 : index
      %107 = vector.load %arg36[%c0_54, %c0_55] : memref<8x128xf32, #tpu.memory_space<vmem>>, vector<8x128xf32>
      %c0_56 = arith.constant 0 : index
      %c0_57 = arith.constant 0 : index
      %108 = vector.load %arg21[%c0_56, %c0_57] : memref<128x384xbf16, #tpu.memory_space<vmem>>, vector<128x384xbf16>
      %c0_58 = arith.constant 0 : index
      %c0_59 = arith.constant 0 : index
      %109 = vector.load %arg22[%c0_58, %c0_59] : memref<128x128xbf16, #tpu.memory_space<vmem>>, vector<128x128xbf16>
      %110 = arith.truncf %107 : vector<8x128xf32> to vector<8x128xbf16>
      %cst_60 = arith.constant dense<0.000000e+00> : vector<8x384xf32>
      %111 = tpu.matmul %110, %108, %cst_60 {dimension_numbers = #tpu.dot_dimension_numbers<[1], [0], [0], [1], [0, 0, 1, 1], [], []>} : vector<8x128xbf16>, vector<128x384xbf16>, vector<8x384xf32> -> vector<8x384xf32>
      %112 = vector.extract_strided_slice %111 {offsets = [0, 0], sizes = [8, 128], strides = [1, 1]} : vector<8x384xf32> to vector<8x128xf32>
      %113 = vector.extract_strided_slice %111 {offsets = [0, 128], sizes = [8, 128], strides = [1, 1]} : vector<8x384xf32> to vector<8x128xf32>
      %114 = vector.extract_strided_slice %111 {offsets = [0, 256], sizes = [8, 128], strides = [1, 1]} : vector<8x384xf32> to vector<8x128xf32>
      %115 = arith.truncf %112 : vector<8x128xf32> to vector<8x128xbf16>
      %116 = arith.truncf %113 : vector<8x128xf32> to vector<8x128xbf16>
      %cst_61 = arith.constant dense<0.000000e+00> : vector<8x8xf32>
      %117 = tpu.matmul %115, %116, %cst_61 {dimension_numbers = #tpu.dot_dimension_numbers<[1], [1], [0], [0], [0, 0, 1, 0], [], []>} : vector<8x128xbf16>, vector<8x128xbf16>, vector<8x8xf32> -> vector<8x8xf32>
      %118 = vector.broadcast %1 : vector<1x8xf32> to vector<8x8xf32>
      %119 = arith.addf %117, %118 : vector<8x8xf32>
      %cst_62 = arith.constant dense<0xFF800000> : vector<8xf32>
      %120 = vector.multi_reduction <maximumf>, %119, %cst_62 [1] : vector<8x8xf32> to vector<8xf32>
      %121 = vector.shape_cast %120 : vector<8xf32> to vector<8x1xf32>
      %122 = vector.broadcast %121 : vector<8x1xf32> to vector<8x8xf32>
      %123 = arith.subf %119, %122 : vector<8x8xf32>
      %124 = math.exp %123 : vector<8x8xf32>
      %cst_63 = arith.constant dense<0.000000e+00> : vector<8xf32>
      %125 = vector.multi_reduction <add>, %124, %cst_63 [1] : vector<8x8xf32> to vector<8xf32>
      %126 = vector.shape_cast %125 : vector<8xf32> to vector<8x1xf32>
      %127 = tpu.reciprocal %126 {approx = true} : vector<8x1xf32> -> vector<8x1xf32>
      %128 = vector.broadcast %127 : vector<8x1xf32> to vector<8x8xf32>
      %129 = arith.mulf %124, %128 : vector<8x8xf32>
      %130 = arith.truncf %129 : vector<8x8xf32> to vector<8x8xbf16>
      %131 = arith.truncf %114 : vector<8x128xf32> to vector<8x128xbf16>
      %cst_64 = arith.constant dense<0.000000e+00> : vector<8x128xf32>
      %132 = tpu.matmul %130, %131, %cst_64 {dimension_numbers = #tpu.dot_dimension_numbers<[1], [0], [0], [1], [0, 0, 1, 1], [], []>} : vector<8x8xbf16>, vector<8x128xbf16>, vector<8x128xf32> -> vector<8x128xf32>
      %133 = arith.truncf %132 : vector<8x128xf32> to vector<8x128xbf16>
      %cst_65 = arith.constant dense<0.000000e+00> : vector<8x128xf32>
      %134 = tpu.matmul %133, %109, %cst_65 {dimension_numbers = #tpu.dot_dimension_numbers<[1], [0], [0], [1], [0, 0, 1, 1], [], []>} : vector<8x128xbf16>, vector<128x128xbf16>, vector<8x128xf32> -> vector<8x128xf32>
      %135 = arith.addf %107, %134 : vector<8x128xf32>
      %c0_66 = arith.constant 0 : index
      %c0_67 = arith.constant 0 : index
      %136 = vector.load %arg38[%c0_66, %c0_67] : memref<1x128xf32, #tpu.memory_space<vmem>>, vector<1x128xf32>
      %c0_68 = arith.constant 0 : index
      %c0_69 = arith.constant 0 : index
      %137 = vector.load %arg23[%c0_68, %c0_69] : memref<128x128xbf16, #tpu.memory_space<vmem>>, vector<128x128xbf16>
      %c0_70 = arith.constant 0 : index
      %c0_71 = arith.constant 0 : index
      %138 = vector.load %arg24[%c0_70, %c0_71] : memref<128x128xbf16, #tpu.memory_space<vmem>>, vector<128x128xbf16>
      %c0_72 = arith.constant 0 : index
      %c0_73 = arith.constant 0 : index
      %139 = vector.load %arg25[%c0_72, %c0_73] : memref<1x128xf32, #tpu.memory_space<vmem>>, vector<1x128xf32>
      %c0_74 = arith.constant 0 : index
      %c0_75 = arith.constant 0 : index
      %140 = vector.load %arg26[%c0_74, %c0_75] : memref<128x128xbf16, #tpu.memory_space<vmem>>, vector<128x128xbf16>
      %c0_76 = arith.constant 0 : index
      %c0_77 = arith.constant 0 : index
      %141 = vector.load %arg27[%c0_76, %c0_77] : memref<1x128xf32, #tpu.memory_space<vmem>>, vector<1x128xf32>
      %142 = arith.truncf %135 : vector<8x128xf32> to vector<8x128xbf16>
      %cst_78 = arith.constant dense<0.000000e+00> : vector<8x128xf32>
      %143 = tpu.matmul %142, %137, %cst_78 {dimension_numbers = #tpu.dot_dimension_numbers<[1], [0], [0], [1], [0, 0, 1, 1], [], []>} : vector<8x128xbf16>, vector<128x128xbf16>, vector<8x128xf32> -> vector<8x128xf32>
      %144 = arith.truncf %136 : vector<1x128xf32> to vector<1x128xbf16>
      %cst_79 = arith.constant dense<0.000000e+00> : vector<1x128xf32>
      %145 = tpu.matmul %144, %138, %cst_79 {dimension_numbers = #tpu.dot_dimension_numbers<[1], [0], [0], [1], [0, 0, 1, 1], [], []>} : vector<1x128xbf16>, vector<128x128xbf16>, vector<1x128xf32> -> vector<1x128xf32>
      %146 = vector.broadcast %145 : vector<1x128xf32> to vector<8x128xf32>
      %147 = arith.addf %143, %146 : vector<8x128xf32>
      %148 = vector.broadcast %139 : vector<1x128xf32> to vector<8x128xf32>
      %149 = arith.addf %147, %148 : vector<8x128xf32>
      %150 = arith.negf %149 : vector<8x128xf32>
      %151 = math.exp %150 : vector<8x128xf32>
      %cst_80 = arith.constant 1.000000e+00 : f32
      %152 = vector.broadcast %cst_80 : f32 to vector<8x128xf32>
      %153 = arith.addf %152, %151 : vector<8x128xf32>
      %154 = arith.divf %152, %153 : vector<8x128xf32>
      %155 = arith.mulf %149, %154 : vector<8x128xf32>
      %156 = arith.truncf %155 : vector<8x128xf32> to vector<8x128xbf16>
      %cst_81 = arith.constant dense<0.000000e+00> : vector<8x128xf32>
      %157 = tpu.matmul %156, %140, %cst_81 {dimension_numbers = #tpu.dot_dimension_numbers<[1], [0], [0], [1], [0, 0, 1, 1], [], []>} : vector<8x128xbf16>, vector<128x128xbf16>, vector<8x128xf32> -> vector<8x128xf32>
      %158 = vector.broadcast %141 : vector<1x128xf32> to vector<8x128xf32>
      %159 = arith.addf %157, %158 : vector<8x128xf32>
      %160 = arith.truncf %159 : vector<8x128xf32> to vector<8x128xbf16>
      %c0_82 = arith.constant 0 : index
      %c0_83 = arith.constant 0 : index
      %c0_84 = arith.constant 0 : index
      %161 = vector.load %arg35[%c0_82, %c0_83, %c0_84] : memref<1x8x128xbf16, #tpu.memory_space<vmem>>, vector<1x8x128xbf16>
      %162 = vector.shape_cast %161 : vector<1x8x128xbf16> to vector<8x128xbf16>
      %163 = vector.shape_cast %160 : vector<8x128xbf16> to vector<1x8x128xbf16>
      tpu.vector_store %arg35[%c0_82, %c0_83, %c0_84], %163 {strides = array<i32>} : memref<1x8x128xbf16, #tpu.memory_space<vmem>>, vector<1x8x128xbf16>,
    } else {
    }
    return
  }
  func.func @transform_0(%arg0: i32, %arg1: i32) -> (i32, i32, i32) {
    %c0_i32 = arith.constant 0 : i32
    %c0_i32_0 = arith.constant 0 : i32
    %c0_i32_1 = arith.constant 0 : i32
    return %arg0, %c0_i32, %c0_i32_0 : i32, i32, i32
  }
  func.func @transform_1(%arg0: i32, %arg1: i32) -> (i32, i32, i32) {
    %c0_i32 = arith.constant 0 : i32
    %c0_i32_0 = arith.constant 0 : i32
    %c0_i32_1 = arith.constant 0 : i32
    return %arg0, %c0_i32, %c0_i32_0 : i32, i32, i32
  }
  func.func @transform_2(%arg0: i32, %arg1: i32) -> (i32, i32, i32) {
    %c0_i32 = arith.constant 0 : i32
    %c0_i32_0 = arith.constant 0 : i32
    %c0_i32_1 = arith.constant 0 : i32
    return %arg0, %c0_i32, %c0_i32_0 : i32, i32, i32
  }
  func.func @transform_3(%arg0: i32, %arg1: i32) -> (i32, i32, i32) {
    %c0_i32 = arith.constant 0 : i32
    %c0_i32_0 = arith.constant 0 : i32
    %c0_i32_1 = arith.constant 0 : i32
    return %arg0, %c0_i32, %c0_i32_0 : i32, i32, i32
  }
  func.func @transform_4(%arg0: i32, %arg1: i32) -> (i32, i32, i32) {
    %c0_i32 = arith.constant 0 : i32
    %c0_i32_0 = arith.constant 0 : i32
    %c0_i32_1 = arith.constant 0 : i32
    return %arg0, %c0_i32, %c0_i32_0 : i32, i32, i32
  }
  func.func @transform_5(%arg0: i32, %arg1: i32) -> (i32, i32) {
    %c0_i32 = arith.constant 0 : i32
    %c0_i32_0 = arith.constant 0 : i32
    %c0_i32_1 = arith.constant 0 : i32
    return %c0_i32, %c0_i32_0 : i32, i32
  }
  func.func @transform_6(%arg0: i32, %arg1: i32) -> (i32, i32) {
    %c0_i32 = arith.constant 0 : i32
    %c0_i32_0 = arith.constant 0 : i32
    %c0_i32_1 = arith.constant 0 : i32
    return %c0_i32, %c0_i32_0 : i32, i32
  }
  func.func @transform_7(%arg0: i32, %arg1: i32) -> (i32, i32) {
    %c0_i32 = arith.constant 0 : i32
    %c0_i32_0 = arith.constant 0 : i32
    %c0_i32_1 = arith.constant 0 : i32
    return %c0_i32, %c0_i32_0 : i32, i32
  }
  func.func @transform_8(%arg0: i32, %arg1: i32) -> (i32, i32) {
    %c0_i32 = arith.constant 0 : i32
    %c0_i32_0 = arith.constant 0 : i32
    %c0_i32_1 = arith.constant 0 : i32
    return %c0_i32, %c0_i32_0 : i32, i32
  }
  func.func @transform_9(%arg0: i32, %arg1: i32) -> (i32, i32) {
    %c0_i32 = arith.constant 0 : i32
    %c0_i32_0 = arith.constant 0 : i32
    %c0_i32_1 = arith.constant 0 : i32
    return %c0_i32, %c0_i32_0 : i32, i32
  }
  func.func @transform_10(%arg0: i32, %arg1: i32) -> (i32, i32) {
    %c0_i32 = arith.constant 0 : i32
    %c0_i32_0 = arith.constant 0 : i32
    %c0_i32_1 = arith.constant 0 : i32
    return %c0_i32, %c0_i32_0 : i32, i32
  }
  func.func @transform_11(%arg0: i32, %arg1: i32) -> (i32, i32) {
    %c0_i32 = arith.constant 0 : i32
    %c0_i32_0 = arith.constant 0 : i32
    %c0_i32_1 = arith.constant 0 : i32
    return %c0_i32, %c0_i32_0 : i32, i32
  }
  func.func @transform_12(%arg0: i32, %arg1: i32) -> (i32, i32) {
    %c0_i32 = arith.constant 0 : i32
    %c0_i32_0 = arith.constant 0 : i32
    %c0_i32_1 = arith.constant 0 : i32
    return %c0_i32, %c0_i32_0 : i32, i32
  }
  func.func @transform_13(%arg0: i32, %arg1: i32) -> (i32, i32) {
    %c0_i32 = arith.constant 0 : i32
    %c0_i32_0 = arith.constant 0 : i32
    %c0_i32_1 = arith.constant 0 : i32
    return %c0_i32, %c0_i32_0 : i32, i32
  }
  func.func @transform_14(%arg0: i32, %arg1: i32) -> (i32, i32) {
    %c0_i32 = arith.constant 0 : i32
    %c0_i32_0 = arith.constant 0 : i32
    %c0_i32_1 = arith.constant 0 : i32
    return %c0_i32, %c0_i32_0 : i32, i32
  }
  func.func @transform_15(%arg0: i32, %arg1: i32) -> (i32, i32) {
    %c0_i32 = arith.constant 0 : i32
    %c0_i32_0 = arith.constant 0 : i32
    %c0_i32_1 = arith.constant 0 : i32
    return %c0_i32, %c0_i32_0 : i32, i32
  }
  func.func @transform_16(%arg0: i32, %arg1: i32) -> (i32, i32) {
    %c0_i32 = arith.constant 0 : i32
    %c0_i32_0 = arith.constant 0 : i32
    %c0_i32_1 = arith.constant 0 : i32
    return %c0_i32, %c0_i32_0 : i32, i32
  }
  func.func @transform_17(%arg0: i32, %arg1: i32) -> (i32, i32) {
    %c0_i32 = arith.constant 0 : i32
    %c0_i32_0 = arith.constant 0 : i32
    %c0_i32_1 = arith.constant 0 : i32
    return %c0_i32, %c0_i32_0 : i32, i32
  }
  func.func @transform_18(%arg0: i32, %arg1: i32) -> (i32, i32) {
    %c0_i32 = arith.constant 0 : i32
    %c0_i32_0 = arith.constant 0 : i32
    %c0_i32_1 = arith.constant 0 : i32
    return %c0_i32, %c0_i32_0 : i32, i32
  }
  func.func @transform_19(%arg0: i32, %arg1: i32) -> (i32, i32) {
    %c0_i32 = arith.constant 0 : i32
    %c0_i32_0 = arith.constant 0 : i32
    %c0_i32_1 = arith.constant 0 : i32
    return %c0_i32, %c0_i32_0 : i32, i32
  }
  func.func @transform_20(%arg0: i32, %arg1: i32) -> (i32, i32) {
    %c0_i32 = arith.constant 0 : i32
    %c0_i32_0 = arith.constant 0 : i32
    %c0_i32_1 = arith.constant 0 : i32
    return %c0_i32, %c0_i32_0 : i32, i32
  }
  func.func @transform_21(%arg0: i32, %arg1: i32) -> (i32, i32) {
    %c0_i32 = arith.constant 0 : i32
    %c0_i32_0 = arith.constant 0 : i32
    %c0_i32_1 = arith.constant 0 : i32
    return %c0_i32, %c0_i32_0 : i32, i32
  }
  func.func @transform_22(%arg0: i32, %arg1: i32) -> (i32, i32) {
    %c0_i32 = arith.constant 0 : i32
    %c0_i32_0 = arith.constant 0 : i32
    %c0_i32_1 = arith.constant 0 : i32
    return %c0_i32, %c0_i32_0 : i32, i32
  }
  func.func @transform_23(%arg0: i32, %arg1: i32) -> (i32, i32) {
    %c0_i32 = arith.constant 0 : i32
    %c0_i32_0 = arith.constant 0 : i32
    %c0_i32_1 = arith.constant 0 : i32
    return %c0_i32, %c0_i32_0 : i32, i32
  }
  func.func @transform_24(%arg0: i32, %arg1: i32) -> (i32, i32) {
    %c0_i32 = arith.constant 0 : i32
    %c0_i32_0 = arith.constant 0 : i32
    %c0_i32_1 = arith.constant 0 : i32
    return %c0_i32, %c0_i32_0 : i32, i32
  }
  func.func @transform_25(%arg0: i32, %arg1: i32) -> (i32, i32) {
    %c0_i32 = arith.constant 0 : i32
    %c0_i32_0 = arith.constant 0 : i32
    %c0_i32_1 = arith.constant 0 : i32
    return %c0_i32, %c0_i32_0 : i32, i32
  }
  func.func @transform_26(%arg0: i32, %arg1: i32) -> (i32, i32, i32) {
    %c0_i32 = arith.constant 0 : i32
    %c0_i32_0 = arith.constant 0 : i32
    %c0_i32_1 = arith.constant 0 : i32
    return %arg1, %c0_i32, %c0_i32_0 : i32, i32, i32
  }
  func.func @transform_27(%arg0: i32, %arg1: i32) -> (i32, i32, i32) {
    %c0_i32 = arith.constant 0 : i32
    %c0_i32_0 = arith.constant 0 : i32
    %c0_i32_1 = arith.constant 0 : i32
    return %arg1, %c0_i32, %c0_i32_0 : i32, i32, i32
  }
  func.func @transform_28(%arg0: i32, %arg1: i32) -> (i32, i32, i32) {
    %c0_i32 = arith.constant 0 : i32
    %c0_i32_0 = arith.constant 0 : i32
    %c0_i32_1 = arith.constant 0 : i32
    return %arg1, %c0_i32, %c0_i32_0 : i32, i32, i32
  }
  func.func @transform_29(%arg0: i32, %arg1: i32) -> (i32, i32, i32) {
    %c0_i32 = arith.constant 0 : i32
    %c0_i32_0 = arith.constant 0 : i32
    %c0_i32_1 = arith.constant 0 : i32
    return %arg1, %c0_i32, %c0_i32_0 : i32, i32, i32
  }
  func.func @transform_30(%arg0: i32, %arg1: i32) -> (i32, i32, i32) {
    %c0_i32 = arith.constant 0 : i32
    %c0_i32_0 = arith.constant 0 : i32
    %c0_i32_1 = arith.constant 0 : i32
    return %arg1, %c0_i32, %c0_i32_0 : i32, i32, i32
  }
  func.func @transform_31(%arg0: i32, %arg1: i32) -> (i32, i32, i32) {
    %c0_i32 = arith.constant 0 : i32
    %c0_i32_0 = arith.constant 0 : i32
    %c0_i32_1 = arith.constant 0 : i32
    return %arg1, %c0_i32, %c0_i32_0 : i32, i32, i32
  }
  func.func @transform_32(%arg0: i32, %arg1: i32) -> (i32, i32, i32) {
    %c0_i32 = arith.constant 0 : i32
    %c0_i32_0 = arith.constant 0 : i32
    %c0_i32_1 = arith.constant 0 : i32
    return %arg1, %c0_i32, %c0_i32_0 : i32, i32, i32
  }
  func.func @transform_33(%arg0: i32, %arg1: i32) -> (i32, i32, i32) {
    %c0_i32 = arith.constant 0 : i32
    %c0_i32_0 = arith.constant 0 : i32
    %c0_i32_1 = arith.constant 0 : i32
    return %arg0, %c0_i32, %c0_i32_0 : i32, i32, i32
  }
}

</mosaic_0001>

<bundles_post_ra>
// kernel: pc_diffusion_forward.1
= control target key start
LH: loop header
LB: loop body
LE: loop exit
PB: predicated region body
PF: predicated region fallthrough
CT: control target
= control target key end

     0   :  { %s5519_s6 = smov 1   ;;  %s5520_s10 = smov 2   ;;  %s6285_s0 = inlined_call_operand.smem [shape: u32[34], index: -1, kind: input, shape index: {}] }
   0x1   :  { %s5568_s5 = sld [smem:[%s6285_s0]]   ;;  %s5521_s14 = smov 3  }
   0x2   :  { %s5573_s9 = sld [smem:[%s6285_s0 + %s5519_s6]]   ;;  %s5522_s18 = smov 4  }
   0x3   :  { %s5578_s13 = sld [smem:[%s6285_s0 + %s5520_s10]]   ;;  %s5523_s22 = smov 5  }
   0x4   :  { %s5583_s17 = sld [smem:[%s6285_s0 + %s5521_s14]]   ;;  %s5524_s26 = smov 6  }
   0x5   :  { %s5588_s21 = sld [smem:[%s6285_s0 + %s5522_s18]]   ;;  %s5525_s30 = smov 7  }
   0x6   :  { %s5593_s25 = sld [smem:[%s6285_s0 + %s5523_s22]]   ;;  %s5526_s4 = smov 8  }
   0x7   :  { %6296 = sst [smem:[#allocation5_spill]] %s5568_s5  ;;  %s5527_s10 = smov 9  }
   0x8   :  { %6297 = sst [smem:[#allocation6_spill]] %s5573_s9  ;;  %s5528_s15 = smov 10  }
   0x9   :  { %6298 = sst [smem:[#allocation7_spill]] %s5578_s13  ;;  %s5529_s20 = smov 11  }
   0xa   :  { %6299 = sst [smem:[#allocation8_spill]] %s5583_s17  ;;  %s5531_s1 = smov 13  }
   0xb   :  { %6300 = sst [smem:[#allocation9_spill]] %s5588_s21  ;;  %s5532_s7 = smov 14  }
   0xc   :  { %s5598_s29 = sld [smem:[%s6285_s0 + %s5524_s26]]   ;;  %s5530_s26 = smov 12  }
   0xd   :  { %s5603_s3 = sld [smem:[%s6285_s0 + %s5525_s30]]   ;;  %s5534_s22 = smov 16  }
   0xe   :  { %s5608_s8 = sld [smem:[%s6285_s0 + %s5526_s4]]   ;;  %s5535_s28 = smov 17  }
   0xf   :  { %s5613_s14 = sld [smem:[%s6285_s0 + %s5527_s10]]   ;;  %s5737_s10 = smov 0  }
  0x10   :  { %s5618_s19 = sld [smem:[%s6285_s0 + %s5528_s15]]   ;;  %s5533_s15 = smov 15  }
  0x11   :  { %s5623_s24 = sld [smem:[%s6285_s0 + %s5529_s20]]   ;;  %s5739_s11 = smov 0  }
  0x12   :  { %s5628_s30 = sld [smem:[%s6285_s0 + %s5530_s26]]   ;;  %s5743_s16 = smov 0  }
  0x13   :  { %s5633_s6 = sld [smem:[%s6285_s0 + %s5531_s1]]  }
  0x14   :  { %6301 = sst [smem:[#allocation10_spill]] %s5608_s8 }
  0x15   :  { %6302 = sst [smem:[#allocation11_spill]] %s5613_s14 }
  0x16   :  { %s5638_s12 = sld [smem:[%s6285_s0 + %s5532_s7]]   ;;  %s5536_s7 = smov 18  }
  0x17   :  { %6303 = sst [smem:[#allocation12_spill]] %s5623_s24 }
  0x18   :  { %6304 = sst [smem:[#allocation13_spill]] %s5628_s30 }
  0x19   :  { %6305 = sst [smem:[#allocation14_spill]] %s5633_s6 }
  0x1a   :  { %s5643_s20 = sld [smem:[%s6285_s0 + %s5533_s15]]   ;;  %s5537_s15 = smov 19  }
  0x1b   :  { %s5648_s27 = sld [smem:[%s6285_s0 + %s5534_s22]]   ;;  %s5538_s22 = smov 20  }
  0x1c   :  { %6306 = sst [smem:[#allocation15_spill]] %s5638_s12 }
  0x1d   :  { %s5653_s4 = sld [smem:[%s6285_s0 + %s5535_s28]]   ;;  %s5539_s28 = smov 21  }
  0x1e   :  { %s5658_s6 = sld [smem:[%s6285_s0 + %s5536_s7]]   ;;  %s5540_s7 = smov 22  }
  0x1f   :  { %s5663_s12 = sld [smem:[%s6285_s0 + %s5537_s15]]   ;;  %s5541_s15 = smov 23  }
  0x21   :  { %6307 = sst [smem:[#allocation16_spill]] %s5648_s27 }
  0x22   :  { %s5668_s27 = sld [smem:[%s6285_s0 + %s5538_s22]]   ;;  %s5542_s22 = smov 24  }
  0x23   :  { %6308 = sst [smem:[#allocation17_spill]] %s5653_s4 }
  0x24   :  { %6309 = sst [smem:[#allocation18_spill]] %s5658_s6 }
  0x25   :  { %6310 = sst [smem:[#allocation19_spill]] %s5663_s12 }
  0x26   :  { %s5673_s4 = sld [smem:[%s6285_s0 + %s5539_s28]]   ;;  %s5543_s28 = smov 25  }
  0x27   :  { %s5678_s6 = sld [smem:[%s6285_s0 + %s5540_s7]]   ;;  %s5544_s7 = smov 26  }
  0x28   :  { %6311 = sst [smem:[#allocation20_spill]] %s5668_s27 }
  0x29   :  { %s5683_s12 = sld [smem:[%s6285_s0 + %s5541_s15]]   ;;  %s5545_s15 = smov 27  }
  0x2a   :  { %s5688_s27 = sld [smem:[%s6285_s0 + %s5542_s22]]   ;;  %s5546_s22 = smov 28  }
  0x2c   :  { %6312 = sst [smem:[#allocation21_spill]] %s5673_s4 }
  0x2d   :  { %6313 = sst [smem:[#allocation22_spill]] %s5678_s6 }
  0x2e   :  { %s5693_s4 = sld [smem:[%s6285_s0 + %s5543_s28]]   ;;  %s5547_s28 = smov 29  }
  0x2f   :  { %6314 = sst [smem:[#allocation23_spill]] %s5683_s12 }
  0x30   :  { %6315 = sst [smem:[#allocation24_spill]] %s5688_s27 }
  0x31   :  { %s5698_s6 = sld [smem:[%s6285_s0 + %s5544_s7]]   ;;  %s5548_s7 = smov 30  }
  0x32   :  { %s5703_s12 = sld [smem:[%s6285_s0 + %s5545_s15]]   ;;  %s5549_s15 = smov 31  }
  0x33   :  { %s5708_s27 = sld [smem:[%s6285_s0 + %s5546_s22]]   ;;  %s5550_s22 = smov 32  }
  0x34   :  { %6316 = sst [smem:[#allocation25_spill]] %s5693_s4 }
  0x35   :  { %s5713_s4 = sld [smem:[%s6285_s0 + %s5547_s28]]   ;;  %s5551_s28 = smov 33  }
  0x36   :  { %s5718_s24 = sld [smem:[%s6285_s0 + %s5548_s7]]   ;;  %s5735_s7 = smov 0  }
  0x37   :  { %s5723_s30 = sld [smem:[%s6285_s0 + %s5549_s15]]   ;;  %s5741_s15 = smov 0  }
  0x38   :  { %s5728_s14 = sld [smem:[%s6285_s0 + %s5550_s22]]  }
  0x39   :  { %s5733_s8 = sld [smem:[%s6285_s0 + %s5551_s28]]  }
  0x3a LB: > { %6317 = sst [smem:[#allocation26_spill]] %s5509_s11  ;;  %s86_s0 = sadd.s32 1, %s5509_s11  ;;  %s5517_s16 = sphi %s5743_s16, %s77_s16   ;;  %s5513_s15 = sphi %s5741_s15, %s6353_s15   ;;  %s5509_s11 = sphi %s5739_s11, %s6352_s11   ;;  %s5505_s10 = sphi %s5737_s10, %s6351_s10   ;;  %s5501_s7 = sphi %s5735_s7, %s6350_s7  }
  0x3b   : > { %6318 = sst [smem:[#allocation27_spill]] %s5513_s15  ;;  %s89_s18 = sadd.s32 1, %s5513_s15 }
  0x3c   : > { %6319 = sst [smem:[#allocation28_spill]] %s5517_s16  ;;  %p87_p0 = scmp.ge.s32.totalorder %s86_s0, 2 }
  0x3d   : > { %p4353_p1 = scmp.ge.s32.totalorder %s5517_s16, 1  ;;  %p1035_p2 = scmp.lt.s32.totalorder %s5517_s16, 5 }
  0x3e   : > { %s6355_s0 = smov (%p87_p0, %s86_s0), 0  ;;  %s6357_s18 = smov (!%p87_p0, %s89_s18), %s5513_s15 }
  0x3f   : > { %6320 = sst [smem:[#allocation29_spill]] %s6355_s0  ;;  %p1036_p3 = pnand %p4353_p1, %p1035_p2 }
  0x40   : > { %p91_p4 = scmp.ge.s32.totalorder %s6357_s18, 2 }
  0x41   : > { %1039 = sbr.rel (%p1036_p3) target bundleno = 5763 (0x1683), region = 152 }
  0x42   : > { %s6359_s18 = smov (%p91_p4, %s6357_s18), 0 }
  0x43   : > { %6321 = sst [smem:[#allocation30_spill]] %s6359_s18 }
  0x46   : > { %p1165_p5 = scmp.lt.s32.totalorder %s5505_s10, 1  ;;  %s6322_s9 = sld [smem:[#allocation6_spill]] }
  0x47   : > { %s6323_s5 = sld [smem:[#allocation5_spill]]  ;;  %p1182_p6 = scmp.lt.s32.totalorder %s5501_s7, 1 }
  0x48   : > { %s6324_s13 = sld [smem:[#allocation7_spill]]  ;;  %s6361_s10 = smov (!%p1165_p5, %s5505_s10), 1 }
  0x49   : > { %s6325_s17 = sld [smem:[#allocation8_spill]]  ;;  %s4354_s23 = sshll.u32 %s6361_s10, 3 }
  0x4a   : > { %s6326_s21 = sld [smem:[#allocation9_spill]]  ;;  %p4369_p7 = scmp.ne.s32.totalorder %s5501_s7, 0 }
  0x4b   : > { %s1183_s22 = scalar_select %p1182_p6, %s5501_s7, 1 }
  0x4c   : > { %s1171_s26 = scalar_lea.vmem %s6322_s9, %s6361_s10 }
  0x4d   : > { %s5775_s28 = scalar_lea.vmem %s6323_s5, %s4354_s23  ;;  %v5779_v0 = vld [vmem:[%s1171_s26] ss:$0 sm:$0xff]  ;;  %s5141_s0 = smul.u32 192, %s1183_s22 }
  0x4e   : > { %6327 = sst [smem:[#allocation31_spill]] %s5775_s28  ;;  %s1174_s1 = scalar_lea.vmem %s6324_s13, %s6361_s10 }
  0x4f   : > { %s5782_s2 = scalar_lea.vmem %s6325_s17, %s4354_s23  ;;  %s4584_s15 = sshll.u32 %s1183_s22, 6 }
  0x50   : > { %s1181_s18 = scalar_lea.vmem %s6326_s21, %s6361_s10  ;;  %s5789_s11 = scalar_lea.vmem %s5703_s12, %s4584_s15 }
  0x51   : > { %v5786_v1 = vld [vmem:[%s1181_s18] ss:$0 sm:$0xff]  ;;  %s5792_s16 = scalar_lea.vmem %s5713_s4, %s4584_s15  ;;  %s5795_s9 = scalar_lea.vmem %s5698_s6, %s5141_s0 }
  0x52   : > { %s5798_s5 = scalar_lea.vmem %s5708_s27, %s5141_s0  ;;  %s5801_s28 = scalar_lea.vmem %s5718_s24, %s4584_s15 }
  0x53   : > { %s4587_s13 = sshll.u32 %s1183_s22, 7  ;;  %s5807_s23 = scalar_lea.vmem %s5728_s14, %s4584_s15 }
  0x54   : > { %s5804_s26 = scalar_lea.vmem %s5723_s30, %s4587_s13  ;;  %s4368_s17 = sshll.u32 %s6361_s10, 2 }
  0x55   : > { %s5811_s21 = scalar_lea.vmem %s5733_s8, %s4368_s17  ;;  %1227 = sbr.rel (%p4369_p7) target bundleno = 1204 (0x4b4), region = 156 }
  0x56   : > { %s6328_s13 = sld [smem:[#allocation10_spill]] (!%p4369_p7) }
  0x57   : > { %s6329_s17 = sld [smem:[#allocation11_spill]] (!%p4369_p7) }
  0x58   : > { %s6330_s10 = sld [smem:[#allocation13_spill]] (!%p4369_p7) }
  0x59   : > { %s6332_s15 = sld [smem:[#allocation12_spill]] (!%p4369_p7) }
  0x5a   : > { %v1229_v2 = vld [vmem:[%s5593_s25] sm:$0xf]  ;;  %vm1253_vm0 = vcmask 1043456   ;;  %v5552_v3 = vmov 0.0   ;;  %vm5553_vm1 = vmmov 0   ;;  %vm1249_vm2 = vcmask 64512  }
  0x5b   : > { %4755 = vmatprep.subr.bf16.mxu0 %v5552_v3  ;;  %v1255_v4 = vsel %vm1253_vm0, %v1229_v2, 0  ;;  %4757 = vmatprep.mubr.msk.bf16.mxu0 %vm5553_vm1, %v5552_v3  ;;  %v1228_v5 = vld [vmem:[%s1174_s1] sm:$0x1]  ;;  %v5223_v7 = vld [vmem:[%s5603_s3 + $0x38] sm:$0xff]   ;;  %v5224_v8 = vld [vmem:[%s5603_s3 + $0x30] sm:$0xff]   ;;  %v1520_v62 = vlaneseq  ;;  %s6333_s18 = sld [smem:[#allocation15_spill]] }
  0x5c   : > { %4756 = vmatpush3.bf16.msra.mxu0 %v1255_v4  ;;  %v1248_v6 = vpack.c.bf16 %v1228_v5, %v1228_v5  ;;  %4761 = vmatprep.subr.bf16.mxu1 %v5552_v3  ;;  %v5225_v9 = vld [vmem:[%s5603_s3 + $0x28] sm:$0xff]   ;;  %v5226_v10 = vld [vmem:[%s5603_s3 + $0x20] sm:$0xff]   ;;  %v5227_v11 = vld [vmem:[%s5603_s3 + $0x18] sm:$0xff]   ;;  %s6334_s22 = sld [smem:[#allocation31_spill]] }
  0x5d   : > { %4777 = vmatprep.mubr.msk.bf16.mxu1 %vm5553_vm1, %v5552_v3  ;;  %4781 = vmatprep.subr.bf16.mxu0 %v5552_v3  ;;  %v5228_v12 = vld [vmem:[%s5603_s3 + $0x10] sm:$0xff]   ;;  %v5229_v13 = vld [vmem:[%s5603_s3 + $0x8] sm:$0xff]   ;;  %v5230_v14 = vld [vmem:[%s5603_s3] sm:$0xff]   ;;  %v1521_v63 = vshrl.u32 %v1520_v62, 7  ;;  %s6335_s1 = sld [smem:[#allocation17_spill]] }
  0x5e   : > { %4762 = vmatpush3.bf16.msra.mxu1 %v5223_v7  ;;  %v5231_v15 = vld [vmem:[%s5618_s19 + $0x38] sm:$0xff]   ;;  %v5233_v16 = vld [vmem:[%s5618_s19 + $0x30] sm:$0xff]   ;;  %v5235_v17 = vld [vmem:[%s5618_s19 + $0x28] sm:$0xff]   ;;  %s6331_s0 = smov %s6330_s10 }
  0x5f   : > { %4758 = vmatmul.mubr.msk.bf16.vlgmr.msra.gmra.mxu0 %vm1249_vm2, %v1248_v6  ;;  %4763 = vmatprep.subr.bf16.mxu1 %v5552_v3  ;;  %v5237_v18 = vld [vmem:[%s5618_s19 + $0x20] sm:$0xff]   ;;  %v5239_v19 = vld [vmem:[%s5618_s19 + $0x18] sm:$0xff]   ;;  %v5241_v20 = vld [vmem:[%s5618_s19 + $0x10] sm:$0xff]   ;;  %v1522_v2 = vsub.s32 0, %v1521_v63 }
  0x60   : > { %4797 = vmatprep.mubr.msk.bf16.mxu0 %vm5553_vm1, %v5552_v3  ;;  %4782 = vmatpush3.bf16.msra.mxu0 %v5231_v15  ;;  %v5243_v21 = vld [vmem:[%s5618_s19 + $0x8] sm:$0xff]   ;;  %v1230_v22 = vld [vmem:[%s5598_s29] sm:$0x1]  ;;  %v5232_v33 = vld [vmem:[%s5643_s20 + $0x38] sm:$0xff]  }
  0x61   : > { %4783 = vmatprep.subr.bf16.mxu0 %v5552_v3  ;;  %v5234_v35 = vld [vmem:[%s5643_s20 + $0x30] sm:$0xff]   ;;  %v5236_v36 = vld [vmem:[%s5643_s20 + $0x28] sm:$0xff]   ;;  %v5238_v37 = vld [vmem:[%s5643_s20 + $0x20] sm:$0xff]  }
  0x62   : > { %4764 = vmatpush3.bf16.msra.mxu1 %v5224_v8  ;;  %v5240_v38 = vld [vmem:[%s5643_s20 + $0x18] sm:$0xff]   ;;  %v5242_v39 = vld [vmem:[%s5643_s20 + $0x10] sm:$0xff]   ;;  %v5244_v40 = vld [vmem:[%s5643_s20 + $0x8] sm:$0xff]  }
  0x63   : > { %4765 = vmatprep.subr.bf16.mxu1 %v5552_v3  ;;  %v5245_v41 = vld [vmem:[%s5618_s19] sm:$0xff]   ;;  %v5247_v54 = vld [vmem:[%s6330_s10 + $0x38] sm:$0xff]   ;;  %v5248_v55 = vld [vmem:[%s6331_s0 + $0x30] sm:$0xff]  }
  0x64   : > { %4784 = vmatpush3.bf16.msra.mxu0 %v5233_v16  ;;  %v5246_v42 = vld [vmem:[%s5643_s20] sm:$0xff]   ;;  %v5249_v56 = vld [vmem:[%s6331_s0 + $0x28] sm:$0xff]   ;;  %v5251_v58 = vld [vmem:[%s6331_s0 + $0x18] sm:$0xff]  }
  0x65   : > { %4785 = vmatprep.subr.bf16.mxu0 %v5552_v3  ;;  %v1247_v43 = vld [vmem:[%s6328_s13] sm:$0x1]  ;;  %v5252_v59 = vld [vmem:[%s6331_s0 + $0x10] sm:$0xff]   ;;  %v5253_v60 = vld [vmem:[%s6331_s0 + $0x8] sm:$0xff]   ;;  %s6337_s13 = sld [smem:[#allocation16_spill]] }
  0x66   : > { %4766 = vmatpush3.bf16.msra.mxu1 %v5225_v9  ;;  %v1395_v45 = vld [vmem:[%s6329_s17] sm:$0xf]  ;;  %s6338_s17 = sld [smem:[#allocation18_spill]] }
  0x67   : > { %4767 = vmatprep.subr.bf16.mxu1 %v5552_v3  ;;  %v1528_v49 = vsel %vm1253_vm0, %v1395_v45, 0  ;;  %v1394_v52 = vld [vmem:[%s5782_s2] sm:$0xff]  ;;  %s6336_s2 = sld [smem:[#allocation14_spill]] }
  0x68   : > { %4786 = vmatpush3.bf16.msra.mxu0 %v5235_v17  ;;  %v1430_v53 = vpack.c.bf16 %v1394_v52, %v1394_v52  ;;  %v5250_v57 = vld [vmem:[%s6331_s0 + $0x20] sm:$0xff]  }
  0x69   : > { %4787 = vmatprep.subr.bf16.mxu0 %v5552_v3  ;;  %v5254_v61 = vld [vmem:[%s6331_s0] sm:$0xff]  }
  0x6a   : > { %4768 = vmatpush3.bf16.msra.mxu1 %v5226_v10 }
  0x6b   : > { %4769 = vmatprep.subr.bf16.mxu1 %v5552_v3  ;;  %v4409_v45 = vld [vmem:[%s6337_s13] ss:$0 sm:$0xff] }
  0x6c   : > { %4788 = vmatpush3.bf16.msra.mxu0 %v5237_v18 }
  0x6d   : > { %4789 = vmatprep.subr.bf16.mxu0 %v5552_v3 }
  0x6e   : > { %4770 = vmatpush3.bf16.msra.mxu1 %v5227_v11 }
  0x6f   : > { %4771 = vmatprep.subr.bf16.mxu1 %v5552_v3 }
  0x70   : > { %4790 = vmatpush3.bf16.msra.mxu0 %v5239_v19 }
  0x71   : > { %4791 = vmatprep.subr.bf16.mxu0 %v5552_v3 }
  0x72   : > { %4772 = vmatpush3.bf16.msra.mxu1 %v5228_v12 }
  0x73   : > { %4773 = vmatprep.subr.bf16.mxu1 %v5552_v3 }
  0x74   : > { %4792 = vmatpush3.bf16.msra.mxu0 %v5241_v20 }
  0x75   : > { %4793 = vmatprep.subr.bf16.mxu0 %v5552_v3 }
  0x76   : > { %4774 = vmatpush3.bf16.msra.mxu1 %v5229_v13 }
  0x77   : > { %4775 = vmatprep.subr.bf16.mxu1 %v5552_v3 }
  0x78   : > { %4794 = vmatpush3.bf16.msra.mxu0 %v5243_v21 }
  0x79   : > { %4795 = vmatprep.subr.bf16.mxu0 %v5552_v3 }
  0x7a   : > { %4776 = vmatpush3.bf16.msra.mxu1 %v5230_v14  ;;  %v4389_v14 = vld [vmem:[%s6332_s15] ss:$0 sm:$0xff] }
  0x7b   : > { %4827 = vmatprep.subr.bf16.mxu1 %v5552_v3 }
  0x7c   : > { %4796 = vmatpush3.bf16.msra.mxu0 %v5245_v41 }
  0x7d   : > { %4801 = vmatprep.subr.bf16.mxu0 %v5552_v3 }
 0x11f   : > { %v1291_v23 = vpop.f32.mrf.mxu0 }
 0x120   : > { %v1292_v24 = vadd.f32 %v1291_v23, %v1230_v22 }
 0x121   : > { %v4759_v25 = vpop.f32.mrf.mxu0 }
 0x122   : > { %v4371_v26 = vmul.f32 -1.442695, %v1292_v24  ;;  %v1681_v25 = vld [vmem:[%s6333_s18] sm:$0xf] }
 0x123   : > { %v1294_v27 = vpop.f32.mrf.mxu0 }
 0x124   : > { %5263 = vpow2.f32 %v4371_v26 }
 0x125   : > { %v4760_v28 = vpop.f32.mrf.mxu0 }
 0x126   : > { %v1813_v28 = vsel %vm1253_vm0, %v1681_v25, 0 }
 0x131   : > { %v5264_v29 = vpop.eup %5263 }
 0x132   : > { %v1300_v30 = vadd.f32 1.0, %v5264_v29  ;;  %v1680_v29 = vld [vmem:[%s6334_s22] sm:$0xff] }
 0x134   : > { %5265 = vrcp.f32 %v1300_v30  ;;  %v1716_v30 = vpack.c.bf16 %v1680_v29, %v1680_v29 }
 0x141   : > { %v5266_v31 = vpop.eup %5265 }
 0x142   : > { %v1303_v32 = vmul.f32 %v5266_v31, %v1292_v24  ;;  %v5255_v31 = vld [vmem:[%s6335_s1 + $0x38] sm:$0xff]  }
 0x144   : > { %v1304_v34 = vpack.c.bf16 %v1303_v32, %v1303_v32  ;;  %v5256_v32 = vld [vmem:[%s6335_s1 + $0x30] sm:$0xff]  }
 0x146   : > { %4778 = vmatmul.mubr.bf16.vlgmr.msra.gmra.mxu1 %v1304_v34  ;;  %v5258_v34 = vld [vmem:[%s6335_s1 + $0x20] sm:$0xff]  }
 0x147   : > { %4828 = vmatpush3.bf16.msra.mxu1 %v5232_v33  ;;  %4843 = vmatprep.mubr.msk.bf16.mxu1 %vm5553_vm1, %v5552_v3  ;;  %v5257_v33 = vld [vmem:[%s6335_s1 + $0x28] sm:$0xff]  }
 0x148   : > { %4829 = vmatprep.subr.bf16.mxu1 %v5552_v3 }
 0x14b   : > { %4830 = vmatpush3.bf16.msra.mxu1 %v5234_v35  ;;  %v5259_v35 = vld [vmem:[%s6335_s1 + $0x18] sm:$0xff]  }
 0x14c   : > { %4831 = vmatprep.subr.bf16.mxu1 %v5552_v3 }
 0x14f   : > { %4832 = vmatpush3.bf16.msra.mxu1 %v5236_v36  ;;  %v5260_v36 = vld [vmem:[%s6335_s1 + $0x10] sm:$0xff]  }
 0x150   : > { %4833 = vmatprep.subr.bf16.mxu1 %v5552_v3 }
 0x153   : > { %4834 = vmatpush3.bf16.msra.mxu1 %v5238_v37  ;;  %v5261_v37 = vld [vmem:[%s6335_s1 + $0x8] sm:$0xff]  }
 0x154   : > { %4835 = vmatprep.subr.bf16.mxu1 %v5552_v3 }
 0x157   : > { %4836 = vmatpush3.bf16.msra.mxu1 %v5240_v38  ;;  %v5262_v38 = vld [vmem:[%s6335_s1] sm:$0xff]  }
 0x158   : > { %4837 = vmatprep.subr.bf16.mxu1 %v5552_v3 }
 0x15b   : > { %4838 = vmatpush3.bf16.msra.mxu1 %v5242_v39  ;;  %v4391_v39 = vld [vmem:[%s6336_s2] ss:$0 sm:$0xff] }
 0x15c   : > { %4839 = vmatprep.subr.bf16.mxu1 %v5552_v3 }
 0x15f   : > { %4840 = vmatpush3.bf16.msra.mxu1 %v5244_v40 }
 0x160   : > { %4841 = vmatprep.subr.bf16.mxu1 %v5552_v3 }
 0x163   : > { %4842 = vmatpush3.bf16.msra.mxu1 %v5246_v42 }
 0x164   : > { %4853 = vmatprep.subr.bf16.mxu1 %v5552_v3 }
 0x206   : > { %v1387_v44 = vpop.f32.mrf.mxu1 }
 0x207   : > { %v1388_v46 = vadd.f32 %v1387_v44, %v1247_v43 }
 0x208   : > { %v4779_v47 = vpop.f32.mrf.mxu1 }
 0x209   : > { %1393 = vst [vmem:[#allocation4] sm:$0x1] %v1388_v46  ;;  %v1431_v48 = vpack.c.bf16 %v1388_v46, %v1388_v46 }
 0x20a   : > { %v1390_v50 = vpop.f32.mrf.mxu1 }
 0x20b   : > { %4798 = vmatmul.mubr.bf16.vlgmr.msra.gmra.mxu0 %v1431_v48  ;;  %4844 = vmatmul.mubr.bf16.vlgmr.msra.gmra.mxu1 %v1431_v48 }
 0x20c   : > { %4802 = vmatpush3.bf16.msra.mxu0 %v1528_v49  ;;  %v4780_v51 = vpop.f32.mrf.mxu1  ;;  %4803 = vmatprep.mubr.msk.bf16.mxu0 %vm5553_vm1, %v5552_v3 }
 0x20d   : > { %4807 = vmatprep.subr.bf16.mxu0 %v5552_v3  ;;  %4869 = vmatprep.mubr.msk.bf16.mxu1 %vm5553_vm1, %v5552_v3 }
 0x20e   : > { %4854 = vmatpush3.bf16.msra.mxu1 %v5255_v31 }
 0x20f   : > { %4855 = vmatprep.subr.bf16.mxu1 %v5552_v3 }
 0x212   : > { %4856 = vmatpush3.bf16.msra.mxu1 %v5256_v32 }
 0x213   : > { %4804 = vmatmul.mubr.msk.bf16.vlgmr.msra.gmra.mxu0 %vm1249_vm2, %v1430_v53  ;;  %4857 = vmatprep.subr.bf16.mxu1 %v5552_v3 }
 0x214   : > { %4823 = vmatprep.mubr.msk.bf16.mxu0 %vm5553_vm1, %v5552_v3  ;;  %4808 = vmatpush3.bf16.msra.mxu0 %v5247_v54 }
 0x215   : > { %4809 = vmatprep.subr.bf16.mxu0 %v5552_v3 }
 0x216   : > { %4858 = vmatpush3.bf16.msra.mxu1 %v5257_v33 }
 0x217   : > { %4859 = vmatprep.subr.bf16.mxu1 %v5552_v3 }
 0x218   : > { %4810 = vmatpush3.bf16.msra.mxu0 %v5248_v55 }
 0x219   : > { %4811 = vmatprep.subr.bf16.mxu0 %v5552_v3 }
 0x21a   : > { %4860 = vmatpush3.bf16.msra.mxu1 %v5258_v34 }
 0x21b   : > { %4861 = vmatprep.subr.bf16.mxu1 %v5552_v3 }
 0x21c   : > { %4812 = vmatpush3.bf16.msra.mxu0 %v5249_v56 }
 0x21d   : > { %4813 = vmatprep.subr.bf16.mxu0 %v5552_v3 }
 0x21e   : > { %4862 = vmatpush3.bf16.msra.mxu1 %v5259_v35 }
 0x21f   : > { %4863 = vmatprep.subr.bf16.mxu1 %v5552_v3 }
 0x220   : > { %4814 = vmatpush3.bf16.msra.mxu0 %v5250_v57  ;;  %v4411_v57 = vld [vmem:[%s6338_s17] ss:$0 sm:$0xff] }
 0x221   : > { %4815 = vmatprep.subr.bf16.mxu0 %v5552_v3 }
 0x222   : > { %4864 = vmatpush3.bf16.msra.mxu1 %v5260_v36 }
 0x223   : > { %4865 = vmatprep.subr.bf16.mxu1 %v5552_v3 }
 0x224   : > { %4816 = vmatpush3.bf16.msra.mxu0 %v5251_v58 }
 0x225   : > { %4817 = vmatprep.subr.bf16.mxu0 %v5552_v3 }
 0x226   : > { %4866 = vmatpush3.bf16.msra.mxu1 %v5261_v37 }
 0x227   : > { %4867 = vmatprep.subr.bf16.mxu1 %v5552_v3 }
 0x228   : > { %4818 = vmatpush3.bf16.msra.mxu0 %v5252_v59 }
 0x229   : > { %4819 = vmatprep.subr.bf16.mxu0 %v5552_v3 }
 0x22a   : > { %4868 = vmatpush3.bf16.msra.mxu1 %v5262_v38 }
 0x22c   : > { %4820 = vmatpush3.bf16.msra.mxu0 %v5253_v60 }
 0x22d   : > { %4821 = vmatprep.subr.bf16.mxu0 %v5552_v3 }
 0x230   : > { %4822 = vmatpush3.bf16.msra.mxu0 %v5254_v61 }
 0x231   : > { %4847 = vmatprep.subr.bf16.mxu0 %v5552_v3 }
 0x2cb   : > { %v1514_v4 = vpop.f32.mrf.mxu0  ;;  %v1799_v5 = vpop.f32.mrf.mxu1 }
 0x2cc   : > { %v5905_v6 = vrot.slane %v1799_v5, %v1522_v2  ;;  %v1523_v13 = vrot.slane %v1514_v4, %v1522_v2 }
 0x2cd   : > { %v4799_v7 = vpop.f32.mrf.mxu0  ;;  %v4845_v8 = vpop.f32.mrf.mxu1 }
 0x2cf   : > { %v1517_v9 = vpop.f32.mrf.mxu0  ;;  %v1802_v10 = vpop.f32.mrf.mxu1 }
 0x2d1   : > { %v4800_v11 = vpop.f32.mrf.mxu0  ;;  %v4846_v12 = vpop.f32.mrf.mxu1 }
 0x2d3   : > { %v1564_v15 = vpop.f32.mrf.mxu0 }
 0x2d4   : > { %v1565_v16 = vadd.f32 %v1564_v15, %v1523_v13 }
 0x2d5   : > { %v4805_v17 = vpop.f32.mrf.mxu0 }
 0x2d6   : > { %v1576_v18 = vadd.f32 %v4389_v14, %v1565_v16 }
 0x2d7   : > { %v1567_v19 = vpop.f32.mrf.mxu0 }
 0x2d8   : > { %v4390_v20 = vmul.f32 -1.442695, %v1576_v18 }
 0x2d9   : > { %v4806_v21 = vpop.f32.mrf.mxu0 }
 0x2da   : > { %5267 = vpow2.f32 %v4390_v20 }
 0x2e7   : > { %v5268_v22 = vpop.eup %5267 }
 0x2e8   : > { %v1580_v23 = vadd.f32 1.0, %v5268_v22 }
 0x2ea   : > { %5269 = vrcp.f32 %v1580_v23 }
 0x2f7   : > { %v5270_v24 = vpop.eup %5269 }
 0x2f8   : > { %v1583_v26 = vmul.f32 %v5270_v24, %v1576_v18 }
 0x2fa   : > { %v1584_v27 = vpack.c.bf16 %v1583_v26, %v1583_v26 }
 0x2fc   : > { %4824 = vmatmul.mubr.bf16.vlgmr.msra.gmra.mxu0 %v1584_v27 }
 0x2fd   : > { %4848 = vmatpush3.bf16.msra.mxu0 %v1813_v28  ;;  %4849 = vmatprep.mubr.msk.bf16.mxu0 %vm5553_vm1, %v5552_v3 }
 0x304   : > { %4850 = vmatmul.mubr.msk.bf16.vlgmr.msra.gmra.mxu0 %vm1249_vm2, %v1716_v30 }
 0x3bc   : > { %v1673_v40 = vpop.f32.mrf.mxu0 }
 0x3bd   : > { %v1674_v41 = vadd.f32 %v4391_v39, %v1673_v40 }
 0x3be   : > { %v4825_v42 = vpop.f32.mrf.mxu0 }
 0x3bf   : > { %1679 = vst [vmem:[#allocation3] sm:$0xff] %v1674_v41 }
 0x3c0   : > { %v1676_v43 = vpop.f32.mrf.mxu0 }
 0x3c2   : > { %v4826_v44 = vpop.f32.mrf.mxu0 }
 0x3c4   : > { %v1849_v46 = vpop.f32.mrf.mxu0 }
 0x3c5   : > { %v1850_v47 = vadd.f32 %v1849_v46, %v5905_v6 }
 0x3c6   : > { %v4851_v48 = vpop.f32.mrf.mxu0 }
 0x3c7   : > { %v1861_v49 = vadd.f32 %v4409_v45, %v1850_v47 }
 0x3c8   : > { %v1852_v50 = vpop.f32.mrf.mxu0 }
 0x3c9   : > { %v4410_v51 = vmul.f32 -1.442695, %v1861_v49 }
 0x3ca   : > { %v4852_v52 = vpop.f32.mrf.mxu0 }
 0x3cb   : > { %5271 = vpow2.f32 %v4410_v51 }
 0x3d8   : > { %v5272_v3 = vpop.eup %5271 }
 0x3d9   : > { %v1865_v53 = vadd.f32 1.0, %v5272_v3 }
 0x3db   : > { %5273 = vrcp.f32 %v1865_v53 }
 0x3e8   : > { %v5274_v54 = vpop.eup %5273 }
 0x3e9   : > { %v1868_v55 = vmul.f32 %v5274_v54, %v1861_v49 }
 0x3eb   : > { %v1869_v56 = vpack.c.bf16 %v1868_v55, %v1868_v55 }
 0x3ed   : > { %4870 = vmatmul.mubr.bf16.vlgmr.msra.gmra.mxu1 %v1869_v56 }
 0x4ad   : > { %v1958_v58 = vpop.f32.mrf.mxu1 }
 0x4ae   : > { %v1959_v59 = vadd.f32 %v4411_v57, %v1958_v58 }
 0x4af   : > { %v4871_v60 = vpop.f32.mrf.mxu1 }
 0x4b0   : > { %1964 = vst [vmem:[#allocation2] sm:$0xff] %v1959_v59 }
 0x4b1   : > { %v1961_v61 = vpop.f32.mrf.mxu1 }
 0x4b3   : > { %v4872_v62 = vpop.f32.mrf.mxu1 }
 0x4b4 PF: > { %v5275_v63 = vld [vmem:[%s5795_s9 + $0xac] ss:$12 sps:$4 sm:$0xff]   ;;  %v5277_v2 = vld [vmem:[%s5795_s9 + $0xa8] ss:$12 sps:$4 sm:$0xff]   ;;  %v5554_v4 = vmov 0   ;;  %v5555_v5 = vmov 0.0  }
 0x4b5   : > { %2176 = vmatprep.mubr.bf16.mxu0 %v5554_v4  ;;  %4873 = vmatprep.subr.bf16.mxu1 %v5555_v5  ;;  %v5278_v6 = vld [vmem:[%s5795_s9 + $0x94] ss:$12 sps:$4 sm:$0xff]   ;;  %vm5556_vm3 = vmmov 0   ;;  %v5280_v7 = vld [vmem:[%s5795_s9 + $0x90] ss:$12 sps:$4 sm:$0xff]   ;;  %vm2290_vm4 = vcmask 1043456  }
 0x4b6   : > { %2144 = vmatprep.subr.bf16.mxu0 %v5275_v63  ;;  %4889 = vmatprep.mubr.msk.bf16.mxu1 %vm5556_vm3, %v5555_v5  ;;  %v5281_v8 = vld [vmem:[%s5795_s9 + $0x7c] ss:$12 sps:$4 sm:$0xff]   ;;  %v5283_v9 = vld [vmem:[%s5795_s9 + $0x78] ss:$12 sps:$4 sm:$0xff]   ;;  %v5286_v11 = vld [vmem:[%s5795_s9 + $0x60] ss:$12 sps:$4 sm:$0xff]  }
 0x4b7   : > { %2145 = vmatpush1.bf16.msra.mxu0 %v5277_v2  ;;  %v5284_v10 = vld [vmem:[%s5795_s9 + $0x64] ss:$12 sps:$4 sm:$0xff]   ;;  %v5287_v13 = vld [vmem:[%s5795_s9 + $0x4c] ss:$12 sps:$4 sm:$0xff]   ;;  %v5289_v15 = vld [vmem:[%s5795_s9 + $0x48] ss:$12 sps:$4 sm:$0xff]  }
 0x4b8   : > { %2146 = vmatprep.subr.bf16.mxu0 %v5278_v6  ;;  %v5299_v12 = vld [vmem:[%s5795_s9 + $0xb0] ss:$12 sps:$4 sm:$0xff]   ;;  %v5300_v14 = vld [vmem:[%s5795_s9 + $0x98] ss:$12 sps:$4 sm:$0xff]   ;;  %v5290_v16 = vld [vmem:[%s5795_s9 + $0x34] ss:$12 sps:$4 sm:$0xff]  }
 0x4b9   : > { %4874 = vmatpush3.bf16.msra.mxu1 %v5299_v12  ;;  %v5292_v17 = vld [vmem:[%s5795_s9 + $0x30] ss:$12 sps:$4 sm:$0xff]   ;;  %v5301_v18 = vld [vmem:[%s5795_s9 + $0x80] ss:$12 sps:$4 sm:$0xff]   ;;  %v5302_v20 = vld [vmem:[%s5795_s9 + $0x68] ss:$12 sps:$4 sm:$0xff]  }
 0x4ba   : > { %4875 = vmatprep.subr.bf16.mxu1 %v5555_v5  ;;  %v5293_v19 = vld [vmem:[%s5795_s9 + $0x1c] ss:$12 sps:$4 sm:$0xff]   ;;  %v5295_v21 = vld [vmem:[%s5795_s9 + $0x18] ss:$12 sps:$4 sm:$0xff]   ;;  %v5298_v24 = vld [vmem:[%s5795_s9] ss:$12 sps:$4 sm:$0xff]  }
 0x4bb   : > { %2147 = vmatpush1.bf16.msra.mxu0 %v5280_v7  ;;  %v5296_v22 = vld [vmem:[%s5795_s9 + $0x4] ss:$12 sps:$4 sm:$0xff]   ;;  %v5305_v28 = vld [vmem:[%s5795_s9 + $0x20] ss:$12 sps:$4 sm:$0xff]   ;;  %v5306_v29 = vld [vmem:[%s5795_s9 + $0x8] ss:$12 sps:$4 sm:$0xff]  }
 0x4bc   : > { %2148 = vmatprep.subr.bf16.mxu0 %v5281_v8  ;;  %v5303_v23 = vld [vmem:[%s5795_s9 + $0x50] ss:$12 sps:$4 sm:$0xff]   ;;  %v5961_v25 = vld [vmem:[#allocation2] sm:$0xff]  ;;  %vm2273_vm5 = vcmask 64512   ;;  %v5309_v3 = vld [vmem:[%s5798_s5 + $0xac] ss:$12 sps:$4 sm:$0xff]  }
 0x4bd   : > { %4876 = vmatpush3.bf16.msra.mxu1 %v5300_v14  ;;  %v5304_v26 = vld [vmem:[%s5795_s9 + $0x38] ss:$12 sps:$4 sm:$0xff]   ;;  %v2015_v27 = vpack.c.bf16 %v5961_v25, %v5961_v25  ;;  %v5332_v54 = vld [vmem:[%s5789_s11 + $0x30] sm:$0xff]   ;;  %v5333_v55 = vld [vmem:[%s5789_s11 + $0x28] sm:$0xff]   ;;  %p4521_p8 = scmp.ne.s32.totalorder %s5501_s7, 1 }
 0x4be   : > { %4877 = vmatprep.subr.bf16.mxu1 %v5555_v5  ;;  %v5331_v53 = vld [vmem:[%s5789_s11 + $0x38] sm:$0xff]   ;;  %v5334_v56 = vld [vmem:[%s5789_s11 + $0x20] sm:$0xff]   ;;  %v5336_v58 = vld [vmem:[%s5789_s11 + $0x10] sm:$0xff]   ;;  %s6340_s9 = sld [smem:[#allocation20_spill]] (!%p4521_p8) }
 0x4bf   : > { %2149 = vmatpush1.bf16.msra.mxu0 %v5283_v9  ;;  %v5335_v57 = vld [vmem:[%s5789_s11 + $0x18] sm:$0xff]   ;;  %v5337_v59 = vld [vmem:[%s5789_s11 + $0x8] sm:$0xff]   ;;  %v5312_v6 = vld [vmem:[%s5798_s5 + $0x94] ss:$12 sps:$4 sm:$0xff]   ;;  %s6341_s7 = sld [smem:[#allocation22_spill]] (!%p4521_p8) }
 0x4c0   : > { %2150 = vmatprep.subr.bf16.mxu0 %v5284_v10  ;;  %v5307_v63 = vld [vmem:[%s5798_s5 + $0xa8] ss:$12 sps:$4 sm:$0xff]   ;;  %v5310_v7 = vld [vmem:[%s5798_s5 + $0x90] ss:$12 sps:$4 sm:$0xff]   ;;  %v5313_v9 = vld [vmem:[%s5798_s5 + $0x78] ss:$12 sps:$4 sm:$0xff]  }
 0x4c1   : > { %4878 = vmatpush3.bf16.msra.mxu1 %v5301_v18  ;;  %v5315_v8 = vld [vmem:[%s5798_s5 + $0x7c] ss:$12 sps:$4 sm:$0xff]   ;;  %v5318_v10 = vld [vmem:[%s5798_s5 + $0x64] ss:$12 sps:$4 sm:$0xff]   ;;  %v5321_v12 = vld [vmem:[%s5798_s5 + $0x4c] ss:$12 sps:$4 sm:$0xff]  }
 0x4c2   : > { %4879 = vmatprep.subr.bf16.mxu1 %v5555_v5  ;;  %v5324_v14 = vld [vmem:[%s5798_s5 + $0x34] ss:$12 sps:$4 sm:$0xff]   ;;  %v5330_v18 = vld [vmem:[%s5798_s5 + $0x4] ss:$12 sps:$4 sm:$0xff]   ;;  %s6347_s10 = sld [smem:[#allocation23_spill]] (!%p4521_p8) }
 0x4c3   : > { %2151 = vmatpush1.bf16.msra.mxu0 %v5286_v11  ;;  %v5316_v11 = vld [vmem:[%s5798_s5 + $0x60] ss:$12 sps:$4 sm:$0xff]   ;;  %s6348_s15 = sld [smem:[#allocation25_spill]] (!%p4521_p8) }
 0x4c4   : > { %2152 = vmatprep.subr.bf16.mxu0 %v5287_v13  ;;  %v5319_v13 = vld [vmem:[%s5798_s5 + $0x48] ss:$12 sps:$4 sm:$0xff]  }
 0x4c5   : > { %4880 = vmatpush3.bf16.msra.mxu1 %v5302_v20  ;;  %v6017_v20 = vld [vmem:[#allocation3] sm:$0xff] }
 0x4c6   : > { %4881 = vmatprep.subr.bf16.mxu1 %v5555_v5 }
 0x4c7   : > { %2153 = vmatpush1.bf16.msra.mxu0 %v5289_v15  ;;  %v5322_v15 = vld [vmem:[%s5798_s5 + $0x30] ss:$12 sps:$4 sm:$0xff]  }
 0x4c8   : > { %2154 = vmatprep.subr.bf16.mxu0 %v5290_v16  ;;  %v5327_v16 = vld [vmem:[%s5798_s5 + $0x1c] ss:$12 sps:$4 sm:$0xff]  }
 0x4c9   : > { %4882 = vmatpush3.bf16.msra.mxu1 %v5303_v23 }
 0x4ca   : > { %4883 = vmatprep.subr.bf16.mxu1 %v5555_v5 }
 0x4cb   : > { %2155 = vmatpush1.bf16.msra.mxu0 %v5292_v17  ;;  %v5325_v17 = vld [vmem:[%s5798_s5 + $0x18] ss:$12 sps:$4 sm:$0xff]  }
 0x4cc   : > { %2156 = vmatprep.subr.bf16.mxu0 %v5293_v19  ;;  %v5328_v19 = vld [vmem:[%s5798_s5] ss:$12 sps:$4 sm:$0xff]  }
 0x4cd   : > { %4884 = vmatpush3.bf16.msra.mxu1 %v5304_v26 }
 0x4ce   : > { %4885 = vmatprep.subr.bf16.mxu1 %v5555_v5 }
 0x4cf   : > { %2157 = vmatpush1.bf16.msra.mxu0 %v5295_v21  ;;  %v2472_v21 = vpack.c.bf16 %v6017_v20, %v6017_v20 }
 0x4d0   : > { %2158 = vmatprep.subr.bf16.mxu0 %v5296_v22  ;;  %v5338_v22 = vld [vmem:[%s5789_s11] sm:$0xff]   ;;  %s6343_s11 = sld [smem:[#allocation21_spill]] (!%p4521_p8) }
 0x4d1   : > { %4886 = vmatpush3.bf16.msra.mxu1 %v5305_v28 }
 0x4d2   : > { %4887 = vmatprep.subr.bf16.mxu1 %v5555_v5 }
 0x4d3   : > { %2159 = vmatpush1.bf16.msra.mxu0 %v5298_v24  ;;  %v5339_v24 = vld [vmem:[%s5798_s5 + $0xb0] ss:$12 sps:$4 sm:$0xff]  }
 0x4d4   : > { %4905 = vmatprep.subr.bf16.mxu0 %v5555_v5 }
 0x4d5   : > { %4888 = vmatpush3.bf16.msra.mxu1 %v5306_v29  ;;  %v5340_v29 = vld [vmem:[%s5798_s5 + $0x98] ss:$12 sps:$4 sm:$0xff]  }
 0x4d6   : > { %2177 = vmatmul.mubr.bf16.vlgmr.msra.gmra.mxu0 %v2015_v27  ;;  %4893 = vmatprep.subr.bf16.mxu1 %v5555_v5 }
 0x4d7   : > { %4921 = vmatprep.mubr.msk.bf16.mxu0 %vm5556_vm3, %v5555_v5  ;;  %4906 = vmatpush3.bf16.msra.mxu0 %v5331_v53 }
 0x4d8   : > { %4890 = vmatmul.mubr.bf16.vlgmr.msra.gmra.mxu1 %v2015_v27  ;;  %4907 = vmatprep.subr.bf16.mxu0 %v5555_v5 }
 0x4d9   : > { %4895 = vmatprep.mubr.msk.bf16.mxu1 %vm5556_vm3, %v5555_v5 }
 0x4db   : > { %4908 = vmatpush3.bf16.msra.mxu0 %v5332_v54 }
 0x4dc   : > { %4909 = vmatprep.subr.bf16.mxu0 %v5555_v5 }
 0x4df   : > { %4910 = vmatpush3.bf16.msra.mxu0 %v5333_v55 }
 0x4e0   : > { %4911 = vmatprep.subr.bf16.mxu0 %v5555_v5 }
 0x4e3   : > { %4912 = vmatpush3.bf16.msra.mxu0 %v5334_v56 }
 0x4e4   : > { %4913 = vmatprep.subr.bf16.mxu0 %v5555_v5 }
 0x4e7   : > { %4914 = vmatpush3.bf16.msra.mxu0 %v5335_v57 }
 0x4e8   : > { %4915 = vmatprep.subr.bf16.mxu0 %v5555_v5 }
 0x4eb   : > { %4916 = vmatpush3.bf16.msra.mxu0 %v5336_v58 }
 0x4ec   : > { %4917 = vmatprep.subr.bf16.mxu0 %v5555_v5 }
 0x4ef   : > { %4918 = vmatpush3.bf16.msra.mxu0 %v5337_v59 }
 0x4f0   : > { %4919 = vmatprep.subr.bf16.mxu0 %v5555_v5 }
 0x4f3   : > { %4920 = vmatpush3.bf16.msra.mxu0 %v5338_v22 }
 0x4f4   : > { %4925 = vmatprep.subr.bf16.mxu0 %v5555_v5 }
 0x596   : > { %v2178_v30 = vpop.f32.mrf.mxu0 }
 0x597   : > { %v2225_v35 = vpack.c.bf16 %v2178_v30, %v2178_v30 }
 0x598   : > { %v2180_v31 = vpop.f32.mrf.mxu0  ;;  %v2219_v36 = vpop.f32.mrf.mxu1 }
 0x599   : > { %v2226_v32 = vpack.c.bf16 %v2180_v31, %v2180_v31  ;;  %v2286_v37 = vpack.c.bf16 %v2219_v36, %v2219_v36  ;;  %v5341_v31 = vld [vmem:[%s5798_s5 + $0x80] ss:$12 sps:$4 sm:$0xff]   ;;  %v5346_v36 = vld [vmem:[%s5798_s5 + $0x8] ss:$12 sps:$4 sm:$0xff]  }
 0x59a   : > { %v2182_v33 = vpop.f32.mrf.mxu0  ;;  %v4891_v38 = vpop.f32.mrf.mxu1 }
 0x59b   : > { %4894 = vmatpush3.bf16.xpose.msra.mxu1 %v2226_v32  ;;  %v2292_v39 = vsel %vm2290_vm4, %v2286_v37, 0  ;;  %v5342_v32 = vld [vmem:[%s5798_s5 + $0x68] ss:$12 sps:$4 sm:$0xff]   ;;  %v5343_v33 = vld [vmem:[%s5798_s5 + $0x50] ss:$12 sps:$4 sm:$0xff]  }
 0x59c   : > { %v2183_v34 = vpop.f32.mrf.mxu0  ;;  %4899 = vmatprep.subr.bf16.mxu1 %v5555_v5  ;;  %v2222_v40 = vpop.f32.mrf.mxu1  ;;  %v5347_v38 = vld [vmem:[%s5801_s28 + $0x38] sm:$0xff]  }
 0x59d   : > { %v5344_v34 = vld [vmem:[%s5798_s5 + $0x38] ss:$12 sps:$4 sm:$0xff]  }
 0x59e   : > { %v4892_v41 = vpop.f32.mrf.mxu1 }
 0x5a2   : > { %4896 = vmatmul.mubr.bf16.vlgmr.msra.gmra.mxu1 %v2225_v35  ;;  %v5345_v35 = vld [vmem:[%s5798_s5 + $0x20] ss:$12 sps:$4 sm:$0xff]   ;;  %s6339_s5 = sld [smem:[#allocation19_spill]] (!%p4521_p8) }
 0x5a3   : > { %4901 = vmatprep.mubr.msk.bf16.mxu1 %vm5556_vm3, %v5555_v5  ;;  %4900 = vmatpush3.bf16.msra.mxu1 %v2292_v39 }
 0x5a4   : > { %2601 = vmatprep.subr.bf16.mxu1 %v5309_v3 }
 0x662   : > { %v2267_v42 = vpop.f32.mrf.mxu1 }
 0x663   : > { %v2268_v43 = vadd.f32 %v5779_v0, %v2267_v42  ;;  %v5348_v42 = vld [vmem:[%s5801_s28 + $0x30] sm:$0xff]  }
 0x664   : > { %v4897_v44 = vpop.f32.mrf.mxu1 }
 0x665   : > { %v2274_v45 = vsel %vm2273_vm5, %v2268_v43, -inf  ;;  %v5349_v44 = vld [vmem:[%s5801_s28 + $0x28] sm:$0xff]  }
 0x666   : > { %2275 = vmax.xlane.f32.xlu0 %v2274_v45  ;;  %v2270_v46 = vpop.f32.mrf.mxu1 }
 0x667   : > { %v5350_v46 = vld [vmem:[%s5801_s28 + $0x20] sm:$0xff]  }
 0x668   : > { %v4898_v47 = vpop.f32.mrf.mxu1 }
 0x669   : > { %v5351_v47 = vld [vmem:[%s5801_s28 + $0x18] sm:$0xff]  }
 0x6ef   : > { %v2276_v48 = vpop.xlane.xlu0 %2275 }
 0x6f0   : > { %v2277_v49 = vsub.f32 %v2268_v43, %v2276_v48  ;;  %v5352_v48 = vld [vmem:[%s5801_s28 + $0x10] sm:$0xff]  }
 0x6f2   : > { %v2278_v50 = vmul.f32 1.442695, %v2277_v49  ;;  %v5353_v49 = vld [vmem:[%s5801_s28 + $0x8] sm:$0xff]  }
 0x6f4   : > { %5395 = vpow2.f32 %v2278_v50  ;;  %v5354_v50 = vld [vmem:[%s5801_s28] sm:$0xff]   ;;  %s6342_s28 = smov (!%p4521_p8), %s6341_s7 }
 0x701   : > { %v5396_v51 = vpop.eup %5395 }
 0x702   : > { %v2280_v52 = vsel %vm2273_vm5, %v5396_v51, 0.0 }
 0x703   : > { %2281 = vadd.xlane.f32.xlu0 %v2280_v52 }
 0x78c   : > { %v2282_v60 = vpop.xlane.xlu0 %2281 }
 0x78d   : > { %5397 = vrcp.f32 %v2282_v60 }
 0x79a   : > { %v5398_v61 = vpop.eup %5397 }
 0x79b   : > { %v2284_v62 = vmul.f32 %v5398_v61, %v5396_v51 }
 0x79d   : > { %v2285_v2 = vpack.c.bf16 %v2284_v62, %v2284_v62 }
 0x79f   : > { %4902 = vmatmul.mubr.msk.bf16.vlgmr.msra.gmra.mxu1 %vm2273_vm5, %v2285_v2 }
 0x7a0   : > { %2602 = vmatpush1.bf16.msra.mxu1 %v5307_v63  ;;  %2633 = vmatprep.mubr.bf16.mxu1 %v5554_v4 }
 0x7a1   : > { %2603 = vmatprep.subr.bf16.mxu1 %v5312_v6 }
 0x7a4   : > { %2604 = vmatpush1.bf16.msra.mxu1 %v5310_v7 }
 0x7a5   : > { %2605 = vmatprep.subr.bf16.mxu1 %v5315_v8 }
 0x7a8   : > { %2606 = vmatpush1.bf16.msra.mxu1 %v5313_v9 }
 0x7a9   : > { %2607 = vmatprep.subr.bf16.mxu1 %v5318_v10 }
 0x7ac   : > { %2608 = vmatpush1.bf16.msra.mxu1 %v5316_v11 }
 0x7ad   : > { %2609 = vmatprep.subr.bf16.mxu1 %v5321_v12 }
 0x7b0   : > { %2610 = vmatpush1.bf16.msra.mxu1 %v5319_v13 }
 0x7b1   : > { %2611 = vmatprep.subr.bf16.mxu1 %v5324_v14 }
 0x7b4   : > { %2612 = vmatpush1.bf16.msra.mxu1 %v5322_v15 }
 0x7b5   : > { %2613 = vmatprep.subr.bf16.mxu1 %v5327_v16 }
 0x7b8   : > { %2614 = vmatpush1.bf16.msra.mxu1 %v5325_v17 }
 0x7b9   : > { %2615 = vmatprep.subr.bf16.mxu1 %v5330_v18 }
 0x7bc   : > { %2616 = vmatpush1.bf16.msra.mxu1 %v5328_v19 }
 0x7bd   : > { %4945 = vmatprep.subr.bf16.mxu1 %v5555_v5 }
 0x7bf   : > { %2634 = vmatmul.mubr.bf16.vlgmr.msra.gmra.mxu1 %v2472_v21 }
 0x7c0   : > { %4947 = vmatprep.mubr.msk.bf16.mxu1 %vm5556_vm3, %v5555_v5 }
 0x85f   : > { %v2328_v23 = vpop.f32.mrf.mxu1 }
 0x860   : > { %v2334_v26 = vpack.c.bf16 %v2328_v23, %v2328_v23  ;;  %v5356_v23 = vld [vmem:[%s5792_s16 + $0x30] sm:$0xff]  }
 0x861   : > { %v4903_v27 = vpop.f32.mrf.mxu1 }
 0x862   : > { %4922 = vmatmul.mubr.bf16.vlgmr.msra.gmra.mxu0 %v2334_v26  ;;  %v5358_v26 = vld [vmem:[%s5792_s16 + $0x20] sm:$0xff]   ;;  %v5359_v27 = vld [vmem:[%s5792_s16 + $0x18] sm:$0xff]  }
 0x863   : > { %v2331_v28 = vpop.f32.mrf.mxu1  ;;  %4926 = vmatpush3.bf16.msra.mxu0 %v5339_v24  ;;  %4941 = vmatprep.mubr.msk.bf16.mxu0 %vm5556_vm3, %v5555_v5  ;;  %v5357_v24 = vld [vmem:[%s5792_s16 + $0x28] sm:$0xff]  }
 0x864   : > { %4927 = vmatprep.subr.bf16.mxu0 %v5555_v5  ;;  %v5360_v28 = vld [vmem:[%s5792_s16 + $0x10] sm:$0xff]  }
 0x865   : > { %v4904_v30 = vpop.f32.mrf.mxu1 }
 0x866   : > { %v5362_v30 = vld [vmem:[%s5792_s16] sm:$0xff]  }
 0x867   : > { %4928 = vmatpush3.bf16.msra.mxu0 %v5340_v29  ;;  %v5361_v29 = vld [vmem:[%s5792_s16 + $0x8] sm:$0xff]  }
 0x868   : > { %4929 = vmatprep.subr.bf16.mxu0 %v5555_v5 }
 0x86b   : > { %4930 = vmatpush3.bf16.msra.mxu0 %v5341_v31  ;;  %v5365_v31 = vld [vmem:[%s5804_s26 + $0x74] ss:$8 sps:$4 sm:$0xff]  }
 0x86c   : > { %4931 = vmatprep.subr.bf16.mxu0 %v5555_v5 }
 0x86f   : > { %4932 = vmatpush3.bf16.msra.mxu0 %v5342_v32 }
 0x870   : > { %4933 = vmatprep.subr.bf16.mxu0 %v5555_v5 }
 0x873   : > { %4934 = vmatpush3.bf16.msra.mxu0 %v5343_v33  ;;  %v5363_v33 = vld [vmem:[%s5804_s26 + $0x70] ss:$8 sps:$4 sm:$0xff]  }
 0x874   : > { %4935 = vmatprep.subr.bf16.mxu0 %v5555_v5 }
 0x877   : > { %4936 = vmatpush3.bf16.msra.mxu0 %v5344_v34 }
 0x878   : > { %4937 = vmatprep.subr.bf16.mxu0 %v5555_v5 }
 0x87b   : > { %4938 = vmatpush3.bf16.msra.mxu0 %v5345_v35  ;;  %v5368_v35 = vld [vmem:[%s5804_s26 + $0x64] ss:$8 sps:$4 sm:$0xff]  }
 0x87c   : > { %4939 = vmatprep.subr.bf16.mxu0 %v5555_v5 }
 0x87f   : > { %v2635_v37 = vpop.f32.mrf.mxu1  ;;  %4940 = vmatpush3.bf16.msra.mxu0 %v5346_v36 }
 0x880   : > { %4977 = vmatprep.subr.bf16.mxu0 %v5555_v5  ;;  %v2682_v45 = vpack.c.bf16 %v2635_v37, %v2635_v37 }
 0x881   : > { %v2637_v39 = vpop.f32.mrf.mxu1 }
 0x882   : > { %v2683_v40 = vpack.c.bf16 %v2637_v39, %v2637_v39  ;;  %4942 = vmatmul.mubr.bf16.vlgmr.msra.gmra.mxu0 %v2472_v21  ;;  %v5355_v21 = vld [vmem:[%s5792_s16 + $0x38] sm:$0xff]   ;;  %s6345_s16 = sld [smem:[#allocation24_spill]] (!%p4521_p8) }
 0x883   : > { %v2639_v41 = vpop.f32.mrf.mxu1  ;;  %4978 = vmatpush3.bf16.msra.mxu0 %v5347_v38  ;;  %4993 = vmatprep.mubr.msk.bf16.mxu0 %vm5556_vm3, %v5555_v5  ;;  %v5366_v38 = vld [vmem:[%s5804_s26 + $0x60] ss:$8 sps:$4 sm:$0xff]   ;;  %v5371_v39 = vld [vmem:[%s5804_s26 + $0x54] ss:$8 sps:$4 sm:$0xff]  }
 0x884   : > { %4946 = vmatpush3.bf16.xpose.msra.mxu1 %v2683_v40  ;;  %4979 = vmatprep.subr.bf16.mxu0 %v5555_v5  ;;  %v5369_v41 = vld [vmem:[%s5804_s26 + $0x50] ss:$8 sps:$4 sm:$0xff]  }
 0x885   : > { %v2640_v43 = vpop.f32.mrf.mxu1  ;;  %4951 = vmatprep.subr.bf16.mxu1 %v5555_v5 }
 0x886   : > { %v5372_v43 = vld [vmem:[%s5804_s26 + $0x40] ss:$8 sps:$4 sm:$0xff]  }
 0x887   : > { %4980 = vmatpush3.bf16.msra.mxu0 %v5348_v42  ;;  %v5374_v42 = vld [vmem:[%s5804_s26 + $0x44] ss:$8 sps:$4 sm:$0xff]  }
 0x888   : > { %4981 = vmatprep.subr.bf16.mxu0 %v5555_v5 }
 0x88b   : > { %4948 = vmatmul.mubr.bf16.vlgmr.msra.gmra.mxu1 %v2682_v45  ;;  %4982 = vmatpush3.bf16.msra.mxu0 %v5349_v44  ;;  %v5377_v44 = vld [vmem:[%s5804_s26 + $0x34] ss:$8 sps:$4 sm:$0xff]   ;;  %v5375_v45 = vld [vmem:[%s5804_s26 + $0x30] ss:$8 sps:$4 sm:$0xff]  }
 0x88c   : > { %4983 = vmatprep.subr.bf16.mxu0 %v5555_v5  ;;  %4953 = vmatprep.mubr.msk.bf16.mxu1 %vm5556_vm3, %v5555_v5 }
 0x88f   : > { %4984 = vmatpush3.bf16.msra.mxu0 %v5350_v46  ;;  %v5378_v46 = vld [vmem:[%s5804_s26 + $0x20] ss:$8 sps:$4 sm:$0xff]  }
 0x890   : > { %4985 = vmatprep.subr.bf16.mxu0 %v5555_v5 }
 0x893   : > { %4986 = vmatpush3.bf16.msra.mxu0 %v5351_v47  ;;  %v5383_v47 = vld [vmem:[%s5804_s26 + $0x14] ss:$8 sps:$4 sm:$0xff]  }
 0x894   : > { %4987 = vmatprep.subr.bf16.mxu0 %v5555_v5 }
 0x897   : > { %4988 = vmatpush3.bf16.msra.mxu0 %v5352_v48  ;;  %v5381_v48 = vld [vmem:[%s5804_s26 + $0x10] ss:$8 sps:$4 sm:$0xff]  }
 0x898   : > { %4989 = vmatprep.subr.bf16.mxu0 %v5555_v5 }
 0x89b   : > { %4990 = vmatpush3.bf16.msra.mxu0 %v5353_v49  ;;  %v5386_v49 = vld [vmem:[%s5804_s26 + $0x4] ss:$8 sps:$4 sm:$0xff]  }
 0x89c   : > { %4991 = vmatprep.subr.bf16.mxu0 %v5555_v5 }
 0x89f   : > { %4992 = vmatpush3.bf16.msra.mxu0 %v5354_v50  ;;  %v5384_v50 = vld [vmem:[%s5804_s26] ss:$8 sps:$4 sm:$0xff]  }
 0x8a0   : > { %5003 = vmatprep.subr.bf16.mxu0 %v5555_v5 }
 0x922   : > { %v2417_v51 = vpop.f32.mrf.mxu0 }
 0x923   : > { %v6066_v52 = vadd.f32 %v2417_v51, %v5961_v25 }
 0x924   : > { %v4923_v3 = vpop.f32.mrf.mxu0 }
 0x925   : > { %v2927_v53 = vpack.c.bf16 %v6066_v52, %v6066_v52 }
 0x926   : > { %v2420_v54 = vpop.f32.mrf.mxu0 }
 0x927   : > { %4994 = vmatmul.mubr.bf16.vlgmr.msra.gmra.mxu0 %v2927_v53 }
 0x928   : > { %v4924_v55 = vpop.f32.mrf.mxu0  ;;  %5005 = vmatprep.mubr.msk.bf16.mxu0 %vm5556_vm3, %v5555_v5 }
 0x942   : > { %v2676_v61 = vpop.f32.mrf.mxu0 }
 0x943   : > { %v2742_v62 = vpack.c.bf16 %v2676_v61, %v2676_v61 }
 0x944   : > { %v4943_v63 = vpop.f32.mrf.mxu0 }
 0x945   : > { %v2747_v2 = vsel %vm2290_vm4, %v2742_v62, 0 }
 0x946   : > { %v2679_v6 = vpop.f32.mrf.mxu0  ;;  %4952 = vmatpush3.bf16.msra.mxu1 %v2747_v2 }
 0x947   : > { %4957 = vmatprep.subr.bf16.mxu1 %v5555_v5 }
 0x948   : > { %v4944_v7 = vpop.f32.mrf.mxu0 }
 0x94b   : > { %v2724_v56 = vpop.f32.mrf.mxu1 }
 0x94c   : > { %v2725_v57 = vadd.f32 %v5786_v1, %v2724_v56 }
 0x94d   : > { %v4949_v58 = vpop.f32.mrf.mxu1 }
 0x94e   : > { %v2730_v59 = vsel %vm2273_vm5, %v2725_v57, -inf }
 0x94f   : > { %2731 = vmax.xlane.f32.xlu1 %v2730_v59  ;;  %v2727_v60 = vpop.f32.mrf.mxu1 }
 0x951   : > { %v4950_v25 = vpop.f32.mrf.mxu1 }
 0x9d8   : > { %v2732_v8 = vpop.xlane.xlu1 %2731 }
 0x9d9   : > { %v2733_v9 = vsub.f32 %v2725_v57, %v2732_v8 }
 0x9db   : > { %v2734_v10 = vmul.f32 1.442695, %v2733_v9 }
 0x9dd   : > { %5399 = vpow2.f32 %v2734_v10 }
 0x9e7   : > { %v6076_v11 = vpop.f32.mrf.mxu0 }
 0x9e9   : > { %v4995_v12 = vpop.f32.mrf.mxu0 }
 0x9ea   : > { %v5400_v13 = vpop.eup %5399 }
 0x9eb   : > { %v2736_v14 = vsel %vm2273_vm5, %v5400_v13, 0.0  ;;  %v3013_v15 = vpop.f32.mrf.mxu0 }
 0x9ec   : > { %2737 = vadd.xlane.f32.xlu1 %v2736_v14 }
 0x9ed   : > { %v4996_v16 = vpop.f32.mrf.mxu0 }
 0xa75   : > { %v2738_v17 = vpop.xlane.xlu1 %2737 }
 0xa76   : > { %5401 = vrcp.f32 %v2738_v17  ;;  %v5387_v17 = vld [vmem:[%s5807_s23 + $0x38] sm:$0xff]  }
 0xa83   : > { %v5402_v18 = vpop.eup %5401 }
 0xa84   : > { %v2740_v19 = vmul.f32 %v5402_v18, %v5400_v13 }
 0xa86   : > { %v2741_v22 = vpack.c.bf16 %v2740_v19, %v2740_v19  ;;  %v5388_v19 = vld [vmem:[%s5807_s23 + $0x30] sm:$0xff]  }
 0xa88   : > { %4954 = vmatmul.mubr.msk.bf16.vlgmr.msra.gmra.mxu1 %vm2273_vm5, %v2741_v22  ;;  %v5390_v22 = vld [vmem:[%s5807_s23 + $0x20] sm:$0xff]  }
 0xa89   : > { %4958 = vmatpush3.bf16.msra.mxu1 %v5355_v21  ;;  %4973 = vmatprep.mubr.msk.bf16.mxu1 %vm5556_vm3, %v5555_v5  ;;  %v5389_v21 = vld [vmem:[%s5807_s23 + $0x28] sm:$0xff]  }
 0xa8a   : > { %4959 = vmatprep.subr.bf16.mxu1 %v5555_v5 }
 0xa8d   : > { %4960 = vmatpush3.bf16.msra.mxu1 %v5356_v23  ;;  %v5391_v23 = vld [vmem:[%s5807_s23 + $0x18] sm:$0xff]  }
 0xa8e   : > { %4961 = vmatprep.subr.bf16.mxu1 %v5555_v5 }
 0xa91   : > { %4962 = vmatpush3.bf16.msra.mxu1 %v5357_v24  ;;  %v5392_v24 = vld [vmem:[%s5807_s23 + $0x10] sm:$0xff]  }
 0xa92   : > { %4963 = vmatprep.subr.bf16.mxu1 %v5555_v5 }
 0xa95   : > { %4964 = vmatpush3.bf16.msra.mxu1 %v5358_v26  ;;  %v5393_v26 = vld [vmem:[%s5807_s23 + $0x8] sm:$0xff]  }
 0xa96   : > { %4965 = vmatprep.subr.bf16.mxu1 %v5555_v5 }
 0xa99   : > { %4966 = vmatpush3.bf16.msra.mxu1 %v5359_v27  ;;  %v5394_v27 = vld [vmem:[%s5807_s23] sm:$0xff]   ;;  %s6346_s23 = smov (!%p4521_p8), %s6345_s16 }
 0xa9a   : > { %4967 = vmatprep.subr.bf16.mxu1 %v5555_v5 }
 0xa9d   : > { %4968 = vmatpush3.bf16.msra.mxu1 %v5360_v28 }
 0xa9e   : > { %4969 = vmatprep.subr.bf16.mxu1 %v5555_v5 }
 0xaa1   : > { %4970 = vmatpush3.bf16.msra.mxu1 %v5361_v29 }
 0xaa2   : > { %4971 = vmatprep.subr.bf16.mxu1 %v5555_v5 }
 0xaa5   : > { %4972 = vmatpush3.bf16.msra.mxu1 %v5362_v30 }
 0xaa6   : > { %3097 = vmatprep.subr.bf16.mxu1 %v5365_v31 }
 0xb48   : > { %v2783_v32 = vpop.f32.mrf.mxu1 }
 0xb49   : > { %v2789_v34 = vpack.c.bf16 %v2783_v32, %v2783_v32 }
 0xb4a   : > { %v4955_v36 = vpop.f32.mrf.mxu1 }
 0xb4b   : > { %4974 = vmatmul.mubr.bf16.vlgmr.msra.gmra.mxu1 %v2789_v34 }
 0xb4c   : > { %v2786_v37 = vpop.f32.mrf.mxu1  ;;  %3098 = vmatpush1.bf16.msra.mxu1 %v5363_v33  ;;  %3129 = vmatprep.mubr.bf16.mxu1 %v5554_v4  ;;  %v5380_v4 = vld [vmem:[%s5804_s26 + $0x24] ss:$8 sps:$4 sm:$0xff]   ;;  %s6344_s26 = smov (!%p4521_p8), %s6343_s11 }
 0xb4d   : > { %3099 = vmatprep.subr.bf16.mxu1 %v5368_v35 }
 0xb4e   : > { %v4956_v40 = vpop.f32.mrf.mxu1 }
 0xb50   : > { %3100 = vmatpush1.bf16.msra.mxu1 %v5366_v38 }
 0xb51   : > { %3101 = vmatprep.subr.bf16.mxu1 %v5371_v39 }
 0xb54   : > { %3102 = vmatpush1.bf16.msra.mxu1 %v5369_v41 }
 0xb55   : > { %3103 = vmatprep.subr.bf16.mxu1 %v5374_v42 }
 0xb58   : > { %3104 = vmatpush1.bf16.msra.mxu1 %v5372_v43 }
 0xb59   : > { %3105 = vmatprep.subr.bf16.mxu1 %v5377_v44 }
 0xb5c   : > { %3106 = vmatpush1.bf16.msra.mxu1 %v5375_v45 }
 0xb5d   : > { %3107 = vmatprep.subr.bf16.mxu1 %v5380_v4 }
 0xb60   : > { %3108 = vmatpush1.bf16.msra.mxu1 %v5378_v46 }
 0xb61   : > { %3109 = vmatprep.subr.bf16.mxu1 %v5383_v47 }
 0xb64   : > { %3110 = vmatpush1.bf16.msra.mxu1 %v5381_v48 }
 0xb65   : > { %3111 = vmatprep.subr.bf16.mxu1 %v5386_v49 }
 0xb68   : > { %3112 = vmatpush1.bf16.msra.mxu1 %v5384_v50 }
 0xb69   : > { %4997 = vmatprep.subr.bf16.mxu1 %v5555_v5 }
 0xc0b   : > { %v2872_v51 = vpop.f32.mrf.mxu1 }
 0xc0c   : > { %v2878_v3 = vadd.f32 %v2872_v51, %v6017_v20  ;;  %v3138_v20 = vpack.c.bf16 %v6076_v11, %v6076_v11 }
 0xc0d   : > { %v4975_v53 = vpop.f32.mrf.mxu1 }
 0xc0e   : > { %v3016_v54 = vpack.c.bf16 %v2878_v3, %v2878_v3  ;;  %3330 = vst [vmem:[#allocation3] sm:$0xff] %v2878_v3 }
 0xc0f   : > { %v2875_v55 = vpop.f32.mrf.mxu1 }
 0xc10   : > { %3130 = vmatmul.mubr.bf16.vlgmr.msra.gmra.mxu1 %v3016_v54 }
 0xc11   : > { %v4976_v56 = vpop.f32.mrf.mxu1  ;;  %4999 = vmatprep.mubr.msk.bf16.mxu1 %vm5556_vm3, %v5555_v5 }
 0xcd0   : > { %v3131_v57 = vpop.f32.mrf.mxu1 }
 0xcd1   : > { %v3139_v58 = vpack.c.bf16 %v3131_v57, %v3131_v57 }
 0xcd2   : > { %v3133_v59 = vpop.f32.mrf.mxu1 }
 0xcd3   : > { %v3192_v60 = vpack.c.bf16 %v3133_v59, %v3133_v59  ;;  %4998 = vmatpush3.bf16.xpose.msra.mxu1 %v3139_v58 }
 0xcd4   : > { %v3135_v25 = vpop.f32.mrf.mxu1 }
 0xcd5   : > { %v3197_v61 = vsel %vm2290_vm4, %v3192_v60, 0 }
 0xcd6   : > { %v3136_v62 = vpop.f32.mrf.mxu1  ;;  %5004 = vmatpush3.bf16.msra.mxu0 %v3197_v61 }
 0xcd7   : > { %5009 = vmatprep.subr.bf16.mxu0 %v5555_v5 }
 0xcda   : > { %5000 = vmatmul.mubr.bf16.vlgmr.msra.gmra.mxu1 %v3138_v20 }
 0xd9a   : > { %v3174_v63 = vpop.f32.mrf.mxu1 }
 0xd9b   : > { %v3175_v2 = vadd.f32 %v5786_v1, %v3174_v63 }
 0xd9c   : > { %v5001_v6 = vpop.f32.mrf.mxu1 }
 0xd9d   : > { %v3180_v7 = vsel %vm2273_vm5, %v3175_v2, -inf }
 0xd9e   : > { %3181 = vmax.xlane.f32.xlu0 %v3180_v7  ;;  %v3177_v8 = vpop.f32.mrf.mxu1 }
 0xda0   : > { %v5002_v9 = vpop.f32.mrf.mxu1 }
 0xe27   : > { %v3182_v10 = vpop.xlane.xlu0 %3181 }
 0xe28   : > { %v3183_v12 = vsub.f32 %v3175_v2, %v3182_v10 }
 0xe2a   : > { %v3184_v13 = vmul.f32 1.442695, %v3183_v12 }
 0xe2c   : > { %5403 = vpow2.f32 %v3184_v13 }
 0xe39   : > { %v5404_v14 = vpop.eup %5403 }
 0xe3a   : > { %v3186_v11 = vsel %vm2273_vm5, %v5404_v14, 0.0 }
 0xe3b   : > { %3187 = vadd.xlane.f32.xlu1 %v3186_v11 }
 0xec4   : > { %v3188_v15 = vpop.xlane.xlu1 %3187 }
 0xec5   : > { %5405 = vrcp.f32 %v3188_v15 }
 0xed2   : > { %v5406_v1 = vpop.eup %5405 }
 0xed3   : > { %v3190_v16 = vmul.f32 %v5406_v1, %v5404_v14 }
 0xed5   : > { %v3191_v18 = vpack.c.bf16 %v3190_v16, %v3190_v16 }
 0xed7   : > { %5006 = vmatmul.mubr.msk.bf16.vlgmr.msra.gmra.mxu0 %vm2273_vm5, %v3191_v18 }
 0xed8   : > { %5010 = vmatpush3.bf16.msra.mxu0 %v5387_v17  ;;  %5025 = vmatprep.mubr.msk.bf16.mxu0 %vm5556_vm3, %v5555_v5 }
 0xed9   : > { %5011 = vmatprep.subr.bf16.mxu0 %v5555_v5 }
 0xedc   : > { %5012 = vmatpush3.bf16.msra.mxu0 %v5388_v19 }
 0xedd   : > { %5013 = vmatprep.subr.bf16.mxu0 %v5555_v5 }
 0xee0   : > { %5014 = vmatpush3.bf16.msra.mxu0 %v5389_v21 }
 0xee1   : > { %5015 = vmatprep.subr.bf16.mxu0 %v5555_v5 }
 0xee4   : > { %5016 = vmatpush3.bf16.msra.mxu0 %v5390_v22 }
 0xee5   : > { %5017 = vmatprep.subr.bf16.mxu0 %v5555_v5 }
 0xee8   : > { %5018 = vmatpush3.bf16.msra.mxu0 %v5391_v23 }
 0xee9   : > { %5019 = vmatprep.subr.bf16.mxu0 %v5555_v5 }
 0xeec   : > { %5020 = vmatpush3.bf16.msra.mxu0 %v5392_v24 }
 0xeed   : > { %5021 = vmatprep.subr.bf16.mxu0 %v5555_v5 }
 0xef0   : > { %5022 = vmatpush3.bf16.msra.mxu0 %v5393_v26 }
 0xef1   : > { %5023 = vmatprep.subr.bf16.mxu0 %v5555_v5 }
 0xef4   : > { %5024 = vmatpush3.bf16.msra.mxu0 %v5394_v27 }
 0xf97   : > { %v3233_v28 = vpop.f32.mrf.mxu0 }
 0xf98   : > { %v3239_v29 = vpack.c.bf16 %v3233_v28, %v3233_v28 }
 0xf99   : > { %v5007_v30 = vpop.f32.mrf.mxu0 }
 0xf9a   : > { %5026 = vmatmul.mubr.bf16.vlgmr.msra.gmra.mxu0 %v3239_v29 }
 0xf9b   : > { %v3236_v31 = vpop.f32.mrf.mxu0 }
 0xf9d   : > { %v5008_v32 = vpop.f32.mrf.mxu0 }
0x105a   : > { %v3322_v33 = vpop.f32.mrf.mxu0 }
0x105b   : > { %v3328_v34 = vadd.f32 %v3322_v33, %v6066_v52 }
0x105c   : > { %v5027_v35 = vpop.f32.mrf.mxu0  ;;  %3334 = sbr.rel (%p4521_p8) target bundleno = 5763 (0x1683), region = 160 }
0x105d   : > { %3329 = vst [vmem:[#allocation2] sm:$0xff] %v3328_v34 }
0x105e   : > { %v3325_v36 = vpop.f32.mrf.mxu0 }
0x1060   : > { %v5028_v37 = vpop.f32.mrf.mxu0 }
0x1061   : > { %v5407_v5 = vld [vmem:[%s6339_s5 + $0xac] ss:$12 sps:$4 sm:$0xff]   ;;  %v5409_v38 = vld [vmem:[%s6339_s5 + $0xa8] ss:$12 sps:$4 sm:$0xff]   ;;  %v5557_v39 = vmov 0   ;;  %v5558_v54 = vmov 0.0  }
0x1062   : > { %3545 = vmatprep.mubr.bf16.mxu0 %v5557_v39  ;;  %3513 = vmatprep.subr.bf16.mxu0 %v5407_v5  ;;  %v5410_v52 = vld [vmem:[%s6339_s5 + $0x94] ss:$12 sps:$4 sm:$0xff]   ;;  %v5412_v40 = vld [vmem:[%s6339_s5 + $0x90] ss:$12 sps:$4 sm:$0xff]   ;;  %v5415_v42 = vld [vmem:[%s6339_s5 + $0x78] ss:$12 sps:$4 sm:$0xff]  }
0x1063   : > { %3514 = vmatpush1.bf16.msra.mxu0 %v5409_v38  ;;  %v5413_v41 = vld [vmem:[%s6339_s5 + $0x7c] ss:$12 sps:$4 sm:$0xff]   ;;  %v5416_v43 = vld [vmem:[%s6339_s5 + $0x64] ss:$12 sps:$4 sm:$0xff]   ;;  %v5418_v44 = vld [vmem:[%s6339_s5 + $0x60] ss:$12 sps:$4 sm:$0xff]   ;;  %5029 = vmatprep.subr.bf16.mxu1 %v5558_v54 }
0x1064   : > { %3515 = vmatprep.subr.bf16.mxu0 %v5410_v52  ;;  %v5419_v45 = vld [vmem:[%s6339_s5 + $0x4c] ss:$12 sps:$4 sm:$0xff]   ;;  %v5421_v4 = vld [vmem:[%s6339_s5 + $0x48] ss:$12 sps:$4 sm:$0xff]   ;;  %v5424_v47 = vld [vmem:[%s6339_s5 + $0x30] ss:$12 sps:$4 sm:$0xff]  }
0x1065   : > { %v5422_v46 = vld [vmem:[%s6339_s5 + $0x34] ss:$12 sps:$4 sm:$0xff]   ;;  %v5425_v48 = vld [vmem:[%s6339_s5 + $0x1c] ss:$12 sps:$4 sm:$0xff]   ;;  %v5427_v49 = vld [vmem:[%s6339_s5 + $0x18] ss:$12 sps:$4 sm:$0xff]  }
0x1066   : > { %v5428_v50 = vld [vmem:[%s6339_s5 + $0x4] ss:$12 sps:$4 sm:$0xff]   ;;  %v5430_v51 = vld [vmem:[%s6339_s5] ss:$12 sps:$4 sm:$0xff]   ;;  %vm5559_vm6 = vmmov 0   ;;  %v5439_v24 = vld [vmem:[%s6340_s9 + $0x38] sm:$0xff]  }
0x1067   : > { %3516 = vmatpush1.bf16.msra.mxu0 %v5412_v40  ;;  %v6161_v3 = vld [vmem:[#allocation2] sm:$0xff]  ;;  %5045 = vmatprep.mubr.msk.bf16.mxu1 %vm5559_vm6, %v5558_v54  ;;  %v5431_v25 = vld [vmem:[%s6339_s5 + $0xb0] ss:$12 sps:$4 sm:$0xff]   ;;  %v5434_v20 = vld [vmem:[%s6339_s5 + $0x68] ss:$12 sps:$4 sm:$0xff]  }
0x1068   : > { %3517 = vmatprep.subr.bf16.mxu0 %v5413_v41  ;;  %v3384_v53 = vpack.c.bf16 %v6161_v3, %v6161_v3  ;;  %5030 = vmatpush3.bf16.msra.mxu1 %v5431_v25  ;;  %v5432_v61 = vld [vmem:[%s6339_s5 + $0x98] ss:$12 sps:$4 sm:$0xff]   ;;  %v5433_v62 = vld [vmem:[%s6339_s5 + $0x80] ss:$12 sps:$4 sm:$0xff]   ;;  %v5435_v63 = vld [vmem:[%s6339_s5 + $0x50] ss:$12 sps:$4 sm:$0xff]  }
0x1069   : > { %5031 = vmatprep.subr.bf16.mxu1 %v5558_v54  ;;  %v5436_v2 = vld [vmem:[%s6339_s5 + $0x38] ss:$12 sps:$4 sm:$0xff]   ;;  %v5437_v6 = vld [vmem:[%s6339_s5 + $0x20] ss:$12 sps:$4 sm:$0xff]   ;;  %v5438_v7 = vld [vmem:[%s6339_s5 + $0x8] ss:$12 sps:$4 sm:$0xff]  }
0x106a   : > { %v5440_v26 = vld [vmem:[%s6340_s9 + $0x30] sm:$0xff]   ;;  %v5441_v27 = vld [vmem:[%s6340_s9 + $0x28] sm:$0xff]   ;;  %v5442_v28 = vld [vmem:[%s6340_s9 + $0x20] sm:$0xff]  }
0x106b   : > { %3518 = vmatpush1.bf16.msra.mxu0 %v5415_v42  ;;  %v5443_v29 = vld [vmem:[%s6340_s9 + $0x18] sm:$0xff]   ;;  %v5444_v30 = vld [vmem:[%s6340_s9 + $0x10] sm:$0xff]   ;;  %v5445_v31 = vld [vmem:[%s6340_s9 + $0x8] sm:$0xff]  }
0x106c   : > { %3519 = vmatprep.subr.bf16.mxu0 %v5416_v43  ;;  %5032 = vmatpush3.bf16.msra.mxu1 %v5432_v61  ;;  %v5446_v36 = vld [vmem:[%s6340_s9] sm:$0xff]   ;;  %v5447_v37 = vld [vmem:[%s6341_s7 + $0x38] sm:$0xff]   ;;  %v5448_v5 = vld [vmem:[%s6342_s28 + $0x30] sm:$0xff]  }
0x106d   : > { %5033 = vmatprep.subr.bf16.mxu1 %v5558_v54  ;;  %v5450_v38 = vld [vmem:[%s6342_s28 + $0x28] sm:$0xff]   ;;  %v5452_v39 = vld [vmem:[%s6342_s28 + $0x20] sm:$0xff]   ;;  %v5454_v52 = vld [vmem:[%s6342_s28 + $0x18] sm:$0xff]  }
0x106e   : > { %v5456_v40 = vld [vmem:[%s6342_s28 + $0x10] sm:$0xff]   ;;  %v5458_v41 = vld [vmem:[%s6342_s28 + $0x8] sm:$0xff]   ;;  %v5460_v42 = vld [vmem:[%s6342_s28] sm:$0xff]  }
0x106f   : > { %3520 = vmatpush1.bf16.msra.mxu0 %v5418_v44  ;;  %v3785_v43 = vld [vmem:[#allocation4] sm:$0x1] }
0x1070   : > { %3521 = vmatprep.subr.bf16.mxu0 %v5419_v45  ;;  %5034 = vmatpush3.bf16.msra.mxu1 %v5433_v62  ;;  %v3837_v44 = vpack.c.bf16 %v3785_v43, %v3785_v43 }
0x1071   : > { %5035 = vmatprep.subr.bf16.mxu1 %v5558_v54 }
0x1073   : > { %3522 = vmatpush1.bf16.msra.mxu0 %v5421_v4  ;;  %v5449_v4 = vld [vmem:[%s6343_s11 + $0x38] sm:$0xff]  }
0x1074   : > { %3523 = vmatprep.subr.bf16.mxu0 %v5422_v46  ;;  %5036 = vmatpush3.bf16.msra.mxu1 %v5434_v20 }
0x1075   : > { %5037 = vmatprep.subr.bf16.mxu1 %v5558_v54 }
0x1077   : > { %3524 = vmatpush1.bf16.msra.mxu0 %v5424_v47 }
0x1078   : > { %3525 = vmatprep.subr.bf16.mxu0 %v5425_v48  ;;  %5038 = vmatpush3.bf16.msra.mxu1 %v5435_v63 }
0x1079   : > { %5039 = vmatprep.subr.bf16.mxu1 %v5558_v54 }
0x107b   : > { %3526 = vmatpush1.bf16.msra.mxu0 %v5427_v49  ;;  %v5451_v49 = vld [vmem:[%s6344_s26 + $0x30] sm:$0xff]  }
0x107c   : > { %3527 = vmatprep.subr.bf16.mxu0 %v5428_v50  ;;  %5040 = vmatpush3.bf16.msra.mxu1 %v5436_v2 }
0x107d   : > { %5041 = vmatprep.subr.bf16.mxu1 %v5558_v54 }
0x107f   : > { %3528 = vmatpush1.bf16.msra.mxu0 %v5430_v51  ;;  %v5453_v51 = vld [vmem:[%s6344_s26 + $0x28] sm:$0xff]  }
0x1080   : > { %5049 = vmatprep.subr.bf16.mxu0 %v5558_v54  ;;  %5042 = vmatpush3.bf16.msra.mxu1 %v5437_v6 }
0x1081   : > { %5043 = vmatprep.subr.bf16.mxu1 %v5558_v54 }
0x1082   : > { %3546 = vmatmul.mubr.bf16.vlgmr.msra.gmra.mxu0 %v3384_v53 }
0x1083   : > { %5051 = vmatprep.mubr.msk.bf16.mxu0 %vm5559_vm6, %v5558_v54 }
0x1084   : > { %5044 = vmatpush3.bf16.msra.mxu1 %v5438_v7 }
0x1085   : > { %5055 = vmatprep.subr.bf16.mxu1 %v5558_v54 }
0x1087   : > { %5046 = vmatmul.mubr.bf16.vlgmr.msra.gmra.mxu1 %v3384_v53  ;;  %v5455_v53 = vld [vmem:[%s6344_s26 + $0x20] sm:$0xff]  }
0x1088   : > { %5057 = vmatprep.mubr.msk.bf16.mxu1 %vm5559_vm6, %v5558_v54 }
0x1142   : > { %v3547_v55 = vpop.f32.mrf.mxu0 }
0x1143   : > { %v3594_v60 = vpack.c.bf16 %v3547_v55, %v3547_v55  ;;  %v5457_v55 = vld [vmem:[%s6344_s26 + $0x18] sm:$0xff]  }
0x1144   : > { %v3549_v56 = vpop.f32.mrf.mxu0 }
0x1145   : > { %v3595_v57 = vpack.c.bf16 %v3549_v56, %v3549_v56  ;;  %v5459_v56 = vld [vmem:[%s6344_s26 + $0x10] sm:$0xff]  }
0x1146   : > { %v3551_v58 = vpop.f32.mrf.mxu0 }
0x1147   : > { %5050 = vmatpush3.bf16.xpose.msra.mxu0 %v3595_v57  ;;  %v3588_v18 = vpop.f32.mrf.mxu1  ;;  %v5461_v57 = vld [vmem:[%s6344_s26 + $0x8] sm:$0xff]   ;;  %v5462_v58 = vld [vmem:[%s6344_s26] sm:$0xff]  }
0x1148   : > { %v3552_v59 = vpop.f32.mrf.mxu0  ;;  %5061 = vmatprep.subr.bf16.mxu0 %v5558_v54 }
0x1149   : > { %v5047_v19 = vpop.f32.mrf.mxu1 }
0x114b   : > { %v3591_v22 = vpop.f32.mrf.mxu1 }
0x114d   : > { %v5048_v23 = vpop.f32.mrf.mxu1 }
0x114e   : > { %5052 = vmatmul.mubr.bf16.vlgmr.msra.gmra.mxu0 %v3594_v60 }
0x114f   : > { %5077 = vmatprep.mubr.msk.bf16.mxu0 %vm5559_vm6, %v5558_v54  ;;  %5062 = vmatpush3.bf16.msra.mxu0 %v5439_v24 }
0x1150   : > { %5063 = vmatprep.subr.bf16.mxu0 %v5558_v54 }
0x1153   : > { %5064 = vmatpush3.bf16.msra.mxu0 %v5440_v26 }
0x1154   : > { %5065 = vmatprep.subr.bf16.mxu0 %v5558_v54 }
0x1157   : > { %5066 = vmatpush3.bf16.msra.mxu0 %v5441_v27 }
0x1158   : > { %5067 = vmatprep.subr.bf16.mxu0 %v5558_v54 }
0x115b   : > { %5068 = vmatpush3.bf16.msra.mxu0 %v5442_v28 }
0x115c   : > { %5069 = vmatprep.subr.bf16.mxu0 %v5558_v54 }
0x115f   : > { %5070 = vmatpush3.bf16.msra.mxu0 %v5443_v29 }
0x1160   : > { %5071 = vmatprep.subr.bf16.mxu0 %v5558_v54 }
0x1163   : > { %5072 = vmatpush3.bf16.msra.mxu0 %v5444_v30 }
0x1164   : > { %5073 = vmatprep.subr.bf16.mxu0 %v5558_v54 }
0x1167   : > { %5074 = vmatpush3.bf16.msra.mxu0 %v5445_v31  ;;  %v4573_v31 = vld [vmem:[%s6348_s15] ss:$0 sm:$0xff] }
0x1168   : > { %5075 = vmatprep.subr.bf16.mxu0 %v5558_v54 }
0x116b   : > { %5076 = vmatpush3.bf16.msra.mxu0 %v5446_v36 }
0x116c   : > { %5101 = vmatprep.subr.bf16.mxu0 %v5558_v54 }
0x120e   : > { %v3630_v8 = vpop.f32.mrf.mxu0 }
0x120f   : > { %v3631_v9 = vadd.f32 %v5779_v0, %v3630_v8  ;;  %v3648_v0 = vpack.c.bf16 %v3588_v18, %v3588_v18  ;;  %v5463_v8 = vld [vmem:[%s6345_s16 + $0x38] sm:$0xff]   ;;  %v4571_v18 = vld [vmem:[%s6347_s10] ss:$0 sm:$0xff] }
0x1210   : > { %v5053_v10 = vpop.f32.mrf.mxu0 }
0x1211   : > { %v3636_v12 = vsel %vm2273_vm5, %v3631_v9, -inf  ;;  %v3653_v21 = vsel %vm2290_vm4, %v3648_v0, 0  ;;  %v5465_v10 = vld [vmem:[%s6346_s23 + $0x28] sm:$0xff]  }
0x1212   : > { %3637 = vmax.xlane.f32.xlu0 %v3636_v12  ;;  %v3633_v13 = vpop.f32.mrf.mxu0  ;;  %5056 = vmatpush3.bf16.msra.mxu1 %v3653_v21  ;;  %v5467_v12 = vld [vmem:[%s6346_s23 + $0x18] sm:$0xff]  }
0x1213   : > { %5081 = vmatprep.subr.bf16.mxu1 %v5558_v54  ;;  %v5468_v13 = vld [vmem:[%s6346_s23 + $0x10] sm:$0xff]  }
0x1214   : > { %v5054_v14 = vpop.f32.mrf.mxu0 }
0x1215   : > { %v5469_v14 = vld [vmem:[%s6346_s23 + $0x8] sm:$0xff]  }
0x129b   : > { %v3638_v11 = vpop.xlane.xlu0 %3637 }
0x129c   : > { %v3639_v15 = vsub.f32 %v3631_v9, %v3638_v11  ;;  %v5464_v9 = vld [vmem:[%s6346_s23 + $0x30] sm:$0xff]   ;;  %v5470_v11 = vld [vmem:[%s6346_s23] sm:$0xff]  }
0x129e   : > { %v3640_v1 = vmul.f32 1.442695, %v3639_v15  ;;  %v3926_v15 = vlaneseq }
0x12a0   : > { %5471 = vpow2.f32 %v3640_v1  ;;  %v3927_v1 = vshrl.u32 %v3926_v15, 7 }
0x12ad   : > { %v5472_v16 = vpop.eup %5471 }
0x12ae   : > { %v3642_v17 = vsel %vm2273_vm5, %v5472_v16, 0.0 }
0x12af   : > { %3643 = vadd.xlane.f32.xlu0 %v3642_v17 }
0x1338   : > { %v3644_v32 = vpop.xlane.xlu0 %3643 }
0x1339   : > { %5473 = vrcp.f32 %v3644_v32 }
0x1346   : > { %v5474_v33 = vpop.eup %5473 }
0x1347   : > { %v3646_v34 = vmul.f32 %v5474_v33, %v5472_v16  ;;  %v3928_v16 = vsub.s32 0, %v3927_v1 }
0x1349   : > { %v3647_v35 = vpack.c.bf16 %v3646_v34, %v3646_v34 }
0x134b   : > { %5058 = vmatmul.mubr.msk.bf16.vlgmr.msra.gmra.mxu1 %vm2273_vm5, %v3647_v35 }
0x134c   : > { %5097 = vmatprep.mubr.msk.bf16.mxu1 %vm5559_vm6, %v5558_v54  ;;  %5082 = vmatpush3.bf16.msra.mxu1 %v5447_v37 }
0x134d   : > { %5083 = vmatprep.subr.bf16.mxu1 %v5558_v54 }
0x1350   : > { %5084 = vmatpush3.bf16.msra.mxu1 %v5448_v5 }
0x1351   : > { %5085 = vmatprep.subr.bf16.mxu1 %v5558_v54 }
0x1354   : > { %5086 = vmatpush3.bf16.msra.mxu1 %v5450_v38 }
0x1355   : > { %5087 = vmatprep.subr.bf16.mxu1 %v5558_v54 }
0x1358   : > { %5088 = vmatpush3.bf16.msra.mxu1 %v5452_v39 }
0x1359   : > { %5089 = vmatprep.subr.bf16.mxu1 %v5558_v54 }
0x135c   : > { %5090 = vmatpush3.bf16.msra.mxu1 %v5454_v52 }
0x135d   : > { %5091 = vmatprep.subr.bf16.mxu1 %v5558_v54 }
0x1360   : > { %5092 = vmatpush3.bf16.msra.mxu1 %v5456_v40 }
0x1361   : > { %5093 = vmatprep.subr.bf16.mxu1 %v5558_v54 }
0x1364   : > { %5094 = vmatpush3.bf16.msra.mxu1 %v5458_v41 }
0x1365   : > { %5095 = vmatprep.subr.bf16.mxu1 %v5558_v54 }
0x1368   : > { %5096 = vmatpush3.bf16.msra.mxu1 %v5460_v42 }
0x1369   : > { %5121 = vmatprep.subr.bf16.mxu1 %v5558_v54 }
0x136b   : > { %5098 = vmatmul.mubr.bf16.vlgmr.msra.gmra.mxu1 %v3837_v44 }
0x136c   : > { %5137 = vmatprep.mubr.msk.bf16.mxu1 %vm5559_vm6, %v5558_v54  ;;  %5122 = vmatpush3.bf16.msra.mxu1 %v5463_v8 }
0x136d   : > { %5123 = vmatprep.subr.bf16.mxu1 %v5558_v54 }
0x1370   : > { %5124 = vmatpush3.bf16.msra.mxu1 %v5464_v9 }
0x1371   : > { %5125 = vmatprep.subr.bf16.mxu1 %v5558_v54 }
0x1374   : > { %5126 = vmatpush3.bf16.msra.mxu1 %v5465_v10 }
0x1375   : > { %5127 = vmatprep.subr.bf16.mxu1 %v5558_v54 }
0x140b   : > { %v3689_v45 = vpop.f32.mrf.mxu1 }
0x140c   : > { %v3695_v46 = vpack.c.bf16 %v3689_v45, %v3689_v45 }
0x140d   : > { %v5059_v47 = vpop.f32.mrf.mxu1 }
0x140e   : > { %5078 = vmatmul.mubr.bf16.vlgmr.msra.gmra.mxu0 %v3695_v46 }
0x140f   : > { %v3692_v48 = vpop.f32.mrf.mxu1  ;;  %5102 = vmatpush3.bf16.msra.mxu0 %v5449_v4  ;;  %5117 = vmatprep.mubr.msk.bf16.mxu0 %vm5559_vm6, %v5558_v54 }
0x1410   : > { %5103 = vmatprep.subr.bf16.mxu0 %v5558_v54 }
0x1411   : > { %v5060_v50 = vpop.f32.mrf.mxu1 }
0x1413   : > { %5104 = vmatpush3.bf16.msra.mxu0 %v5451_v49 }
0x1414   : > { %5105 = vmatprep.subr.bf16.mxu0 %v5558_v54 }
0x1417   : > { %5106 = vmatpush3.bf16.msra.mxu0 %v5453_v51 }
0x1418   : > { %5107 = vmatprep.subr.bf16.mxu0 %v5558_v54 }
0x141b   : > { %5108 = vmatpush3.bf16.msra.mxu0 %v5455_v53 }
0x141c   : > { %5109 = vmatprep.subr.bf16.mxu0 %v5558_v54 }
0x141f   : > { %5110 = vmatpush3.bf16.msra.mxu0 %v5457_v55 }
0x1420   : > { %5111 = vmatprep.subr.bf16.mxu0 %v5558_v54 }
0x1423   : > { %5112 = vmatpush3.bf16.msra.mxu0 %v5459_v56 }
0x1424   : > { %5113 = vmatprep.subr.bf16.mxu0 %v5558_v54 }
0x1427   : > { %5114 = vmatpush3.bf16.msra.mxu0 %v5461_v57 }
0x1428   : > { %5115 = vmatprep.subr.bf16.mxu0 %v5558_v54 }
0x142b   : > { %5116 = vmatpush3.bf16.msra.mxu0 %v5462_v58  ;;  %v3920_v59 = vpop.f32.mrf.mxu1 }
0x142c   : > { %v3929_v17 = vrot.slane %v3920_v59, %v3928_v16 }
0x142d   : > { %v5099_v60 = vpop.f32.mrf.mxu1 }
0x142f   : > { %v3923_v25 = vpop.f32.mrf.mxu1 }
0x1431   : > { %v5100_v61 = vpop.f32.mrf.mxu1 }
0x14ce   : > { %v3778_v62 = vpop.f32.mrf.mxu0 }
0x14cf   : > { %v3784_v20 = vadd.f32 %v3778_v62, %v6161_v3  ;;  %v5466_v3 = vld [vmem:[%s6346_s23 + $0x20] sm:$0xff]  }
0x14d0   : > { %v5079_v63 = vpop.f32.mrf.mxu0  ;;  %5128 = vmatpush3.bf16.msra.mxu1 %v5466_v3 }
0x14d1   : > { %v3836_v2 = vpack.c.bf16 %v3784_v20, %v3784_v20  ;;  %5129 = vmatprep.subr.bf16.mxu1 %v5558_v54 }
0x14d2   : > { %v3781_v6 = vpop.f32.mrf.mxu0 }
0x14d3   : > { %5118 = vmatmul.mubr.bf16.vlgmr.msra.gmra.mxu0 %v3836_v2 }
0x14d4   : > { %v5080_v7 = vpop.f32.mrf.mxu0  ;;  %5130 = vmatpush3.bf16.msra.mxu1 %v5467_v12 }
0x14d5   : > { %5131 = vmatprep.subr.bf16.mxu1 %v5558_v54 }
0x14d8   : > { %5132 = vmatpush3.bf16.msra.mxu1 %v5468_v13 }
0x14d9   : > { %5133 = vmatprep.subr.bf16.mxu1 %v5558_v54 }
0x14dc   : > { %5134 = vmatpush3.bf16.msra.mxu1 %v5469_v14 }
0x14dd   : > { %5135 = vmatprep.subr.bf16.mxu1 %v5558_v54 }
0x14e0   : > { %5136 = vmatpush3.bf16.msra.mxu1 %v5470_v11 }
0x1593   : > { %v4012_v0 = vpop.f32.mrf.mxu0 }
0x1594   : > { %v4013_v19 = vadd.f32 %v4012_v0, %v3929_v17 }
0x1595   : > { %v5119_v21 = vpop.f32.mrf.mxu0 }
0x1596   : > { %v4024_v22 = vadd.f32 %v4571_v18, %v4013_v19 }
0x1597   : > { %v4015_v23 = vpop.f32.mrf.mxu0 }
0x1598   : > { %v4572_v24 = vmul.f32 -1.442695, %v4024_v22 }
0x1599   : > { %v5120_v26 = vpop.f32.mrf.mxu0 }
0x159a   : > { %5475 = vpow2.f32 %v4572_v24 }
0x15a7   : > { %v5476_v27 = vpop.eup %5475 }
0x15a8   : > { %v4028_v28 = vadd.f32 1.0, %v5476_v27 }
0x15aa   : > { %5477 = vrcp.f32 %v4028_v28 }
0x15b7   : > { %v5478_v54 = vpop.eup %5477 }
0x15b8   : > { %v4031_v29 = vmul.f32 %v5478_v54, %v4024_v22 }
0x15ba   : > { %v4032_v30 = vpack.c.bf16 %v4031_v29, %v4031_v29 }
0x15bc   : > { %5138 = vmatmul.mubr.bf16.vlgmr.msra.gmra.mxu1 %v4032_v30 }
0x167c   : > { %v4121_v32 = vpop.f32.mrf.mxu1 }
0x167d   : > { %v4122_v33 = vadd.f32 %v4573_v31, %v4121_v32 }
0x167e   : > { %v5139_v34 = vpop.f32.mrf.mxu1 }
0x167f   : > { %v4127_v35 = vpack.c.bf16 %v4122_v33, %v4122_v33 }
0x1680   : > { %v4124_v36 = vpop.f32.mrf.mxu1 }
0x1681   : > { %4128 = vst [vmem:[%s5811_s21] sm:$0xf] %v4127_v35 }
0x1682   : > { %v5140_v37 = vpop.f32.mrf.mxu1 }
0x1683 PF: > { %s6349_s18 = sld [smem:[#allocation28_spill]] }
0x1684   : > { %s6350_s7 = sld [smem:[#allocation26_spill]] }
0x1685   : > { %s6351_s10 = sld [smem:[#allocation27_spill]] }
0x1686   : > { %s6352_s11 = sld [smem:[#allocation29_spill]] }
0x1687   : > { %s6353_s15 = sld [smem:[#allocation30_spill]] }
0x1689   : > { %s77_s16 = sadd.s32 1, %s6349_s18  }
0x168a   : > { %p74_p9 = scmp.ge.s32.totalorder %s77_s16, 6  }
0x168c   :  { %76 = sbr.rel (!%p74_p9) target bundleno = 58 (0x3a), region = 256 }

</bundles_post_ra>
